<compile_context>
chip_gen: v7x
topology: tpu7x:2x2x1
jax: 0.10.0
libtpu: 0.0.40
codegen_flags: <defaults>
</compile_context>

<pallas_src>
import jax
import jax.numpy as jnp
from jax.experimental import pallas as pl
from jax.experimental.pallas import tpu as pltpu

# ---------------- synthetic config (small-scale xlm-roberta-like) -------------
VOCAB = 64
PAD_ID = 1          # xlm-roberta pad_token_id
B = 2
S = 8
H = 32              # hidden_size
NUM_HEADS = 4
HEAD_DIM = H // NUM_HEADS
FFN = 64            # intermediate_size
LAYERS = 2
MAX_POS = 32
N_CLASSES = 3
N_PAD = 128         # lane-dense padded logits width
LN_EPS = 1e-5


def _layernorm(x, g, b):
    mu = jnp.mean(x, axis=-1, keepdims=True)
    var = jnp.mean((x - mu) ** 2, axis=-1, keepdims=True)
    return (x - mu) * jax.lax.rsqrt(var + LN_EPS) * g + b


# ----------------------------- fused Pallas kernel ----------------------------
def fused_forward_kernel(emb_ref, mask_ref,
                         emb_ln_g_ref, emb_ln_b_ref,
                         wq_ref, bq_ref, wk_ref, bk_ref, wv_ref, bv_ref,
                         wo_ref, bo_ref, ln1_g_ref, ln1_b_ref,
                         w1_ref, b1_ref, w2_ref, b2_ref,
                         ln2_g_ref, ln2_b_ref,
                         head_w_ref, head_b_ref,
                         out_ref):
    # One grid step == one batch element (sharded across TensorCores on v7x).
    scale = 1.0 / jnp.sqrt(jnp.float32(HEAD_DIM))
    key_bias = (mask_ref[...] - 1.0) * 1e9                 # [1, S]; hoisted once

    # embeddings -> LayerNorm (elementwise math in f32)
    x = _layernorm(emb_ref[...], emb_ln_g_ref[...], emb_ln_b_ref[...])   # [S, H] f32

    def layer_body(l, x):
        # ---- masked multi-head self-attention: full-width QKV, 2-D MXU matmuls ----
        x16 = x.astype(jnp.bfloat16)
        q = jnp.dot(x16, wq_ref[l], preferred_element_type=jnp.float32) + bq_ref[l]
        k = jnp.dot(x16, wk_ref[l], preferred_element_type=jnp.float32) + bk_ref[l]
        v = jnp.dot(x16, wv_ref[l], preferred_element_type=jnp.float32) + bv_ref[l]
        q16 = q.astype(jnp.bfloat16)
        k16 = k.astype(jnp.bfloat16)
        v16 = v.astype(jnp.bfloat16)

        heads = []
        for h in range(NUM_HEADS):                          # static lane slices only
            sl = slice(h * HEAD_DIM, (h + 1) * HEAD_DIM)
            s = jnp.einsum('qd,kd->qk', q16[:, sl], k16[:, sl],
                           preferred_element_type=jnp.float32) * scale
            s = s + key_bias                                # mask padded keys
            s = s - jnp.max(s, axis=-1, keepdims=True)      # f32 softmax
            p = jnp.exp(s)
            p = p * pl.reciprocal(jnp.sum(p, axis=-1, keepdims=True), approx=True)
            heads.append(jnp.dot(p.astype(jnp.bfloat16), v16[:, sl],
                                 preferred_element_type=jnp.float32))
        ctx = jnp.concatenate(heads, axis=-1)               # [S, H] f32
        attn = jnp.dot(ctx.astype(jnp.bfloat16), wo_ref[l],
                       preferred_element_type=jnp.float32) + bo_ref[l]
        y = _layernorm(x + attn, ln1_g_ref[l], ln1_b_ref[l])

        # ---- feed-forward ----
        f = jnp.dot(y.astype(jnp.bfloat16), w1_ref[l],
                    preferred_element_type=jnp.float32) + b1_ref[l]
        # TODO(synk): XLM-RoBERTa uses exact (erf) GELU; tanh approximation used here.
        f = jax.nn.gelu(f, approximate=True)
        f = jnp.dot(f.astype(jnp.bfloat16), w2_ref[l],
                    preferred_element_type=jnp.float32) + b2_ref[l]
        return _layernorm(y + f, ln2_g_ref[l], ln2_b_ref[l])

    x = jax.lax.fori_loop(0, LAYERS, layer_body, x, unroll=True)

    # CLS token -> Dropout(p=0) is identity -> ReLU -> Linear head (lane-dense 128)
    cls = jnp.maximum(x[0:1, :], 0.0)                       # [1, H]
    out_ref[...] = jnp.dot(cls.astype(jnp.bfloat16), head_w_ref[...],
                           preferred_element_type=jnp.float32) + head_b_ref[...]


# ------------------------------ wrapper ----------------------------------------
_RESIDENT = pl.BlockSpec(memory_space=pltpu.MemorySpace.VMEM)   # whole array in VMEM


def title_model_forward(input_ids, params):
    mask = (input_ids != PAD_ID)
    mask_f = mask.astype(jnp.float32)                            # [B, S]
    mask_i = mask.astype(jnp.int32)
    # xlm-roberta style position ids: cumsum(mask)*mask + pad_idx
    pos_ids = jnp.cumsum(mask_i, axis=1) * mask_i + PAD_ID       # [B, S]

    # tiny embedding gathers stay in plain JAX (glue); result feeds the fused kernel
    emb = (jnp.take(params['word_emb'], input_ids, axis=0)
           + jnp.take(params['pos_emb'], pos_ids, axis=0)
           + params['type_emb'][0])                              # [B, S, H] f32

    layer_inputs = params['layers']                              # 16 stacked arrays
    in_specs = ([pl.BlockSpec((None, S, H), lambda b: (b, 0, 0)),    # emb, per batch
                 pl.BlockSpec((None, 1, S), lambda b: (b, 0, 0))]    # mask, per batch
                + [_RESIDENT] * (2 + len(layer_inputs) + 2))         # weights resident

    out = pl.pallas_call(
        fused_forward_kernel,
        out_shape=jax.ShapeDtypeStruct((B, 1, N_PAD), jnp.float32),
        grid=(B,),
        in_specs=in_specs,
        out_specs=pl.BlockSpec((None, 1, N_PAD), lambda b: (b, 0, 0)),
        compiler_params=pltpu.CompilerParams(
            dimension_semantics=("parallel",)),                  # 2 TCs on v7x
    )(emb, mask_f[:, None, :],
      params['emb_ln_g'], params['emb_ln_b'],
      *layer_inputs,
      params['head_w'], params['head_b'])

    return out[:, 0, :N_CLASSES]                                 # [B, 3] f32


# ------------------------------ parameters --------------------------------------
def init_params(key):
    def normal(k, shape):
        return jax.random.normal(k, shape, jnp.float32) * 0.02

    keys = iter(jax.random.split(key, 4 + LAYERS * 6))

    word_emb = normal(next(keys), (VOCAB, H))
    pos_emb = normal(next(keys), (MAX_POS, H))
    # XLM-RoBERTa zeroes the padding_idx rows of the embedding tables
    word_emb = word_emb.at[PAD_ID].set(0.0)
    pos_emb = pos_emb.at[PAD_ID].set(0.0)

    # head weight padded to 128 lanes for a lane-dense store (extra cols are zero)
    head_w = jnp.zeros((H, N_PAD), jnp.float32)
    head_w = head_w.at[:, :N_CLASSES].set(normal(next(keys), (H, N_CLASSES)))

    params = {
        'word_emb': word_emb,
        'pos_emb': pos_emb,
        'type_emb': normal(next(keys), (1, H)),
        'emb_ln_g': jnp.ones((1, H), jnp.float32),
        'emb_ln_b': jnp.zeros((1, H), jnp.float32),
        'head_w': head_w.astype(jnp.bfloat16),
        'head_b': jnp.zeros((1, N_PAD), jnp.float32),
    }

    wq, wk, wv, wo, w1, w2 = [], [], [], [], [], []
    for _ in range(LAYERS):
        wq.append(normal(next(keys), (H, H)))
        wk.append(normal(next(keys), (H, H)))
        wv.append(normal(next(keys), (H, H)))
        wo.append(normal(next(keys), (H, H)))
        w1.append(normal(next(keys), (H, FFN)))
        w2.append(normal(next(keys), (FFN, H)))

    zeros_h = jnp.zeros((LAYERS, 1, H), jnp.float32)
    ones_h = jnp.ones((LAYERS, 1, H), jnp.float32)
    params['layers'] = (
        jnp.stack(wq).astype(jnp.bfloat16), zeros_h,                 # wq, bq
        jnp.stack(wk).astype(jnp.bfloat16), zeros_h,                 # wk, bk
        jnp.stack(wv).astype(jnp.bfloat16), zeros_h,                 # wv, bv
        jnp.stack(wo).astype(jnp.bfloat16), zeros_h,                 # wo, bo
        ones_h, zeros_h,                                             # ln1 g, b
        jnp.stack(w1).astype(jnp.bfloat16),
        jnp.zeros((LAYERS, 1, FFN), jnp.float32),                    # w1, b1
        jnp.stack(w2).astype(jnp.bfloat16), zeros_h,                 # w2, b2
        ones_h, zeros_h,                                             # ln2 g, b
    )
    return params


# ------------------------------ main --------------------------------------------
if __name__ == "__main__":
    key = jax.random.PRNGKey(0)
    k_ids, k_params = jax.random.split(key)

    input_ids = jax.random.randint(k_ids, (B, S), 2, VOCAB, dtype=jnp.int32)
    # pad the tail of the second example to exercise the attention mask
    input_ids = input_ids.at[1, S - 3:].set(PAD_ID)

    params = init_params(k_params)
    logits = jax.jit(title_model_forward)(input_ids, params)
    jax.block_until_ready(logits)
    assert logits.shape == (B, N_CLASSES) and logits.dtype == jnp.float32
    print("KERNEL_OK")
</pallas_src>

<mosaic_0001>
module attributes {stable_mosaic.version = 11 : i64} {
  func.func @fused_forward_kernel(%arg0: i32, %arg1: memref<1x8x32xf32, #tpu.memory_space<vmem>>, %arg2: memref<1x1x8xf32, #tpu.memory_space<vmem>>, %arg3: memref<1x32xf32, #tpu.memory_space<vmem>>, %arg4: memref<1x32xf32, #tpu.memory_space<vmem>>, %arg5: memref<2x32x32xbf16, #tpu.memory_space<vmem>>, %arg6: memref<2x1x32xf32, #tpu.memory_space<vmem>>, %arg7: memref<2x32x32xbf16, #tpu.memory_space<vmem>>, %arg8: memref<2x1x32xf32, #tpu.memory_space<vmem>>, %arg9: memref<2x32x32xbf16, #tpu.memory_space<vmem>>, %arg10: memref<2x1x32xf32, #tpu.memory_space<vmem>>, %arg11: memref<2x32x32xbf16, #tpu.memory_space<vmem>>, %arg12: memref<2x1x32xf32, #tpu.memory_space<vmem>>, %arg13: memref<2x1x32xf32, #tpu.memory_space<vmem>>, %arg14: memref<2x1x32xf32, #tpu.memory_space<vmem>>, %arg15: memref<2x32x64xbf16, #tpu.memory_space<vmem>>, %arg16: memref<2x1x64xf32, #tpu.memory_space<vmem>>, %arg17: memref<2x64x32xbf16, #tpu.memory_space<vmem>>, %arg18: memref<2x1x32xf32, #tpu.memory_space<vmem>>, %arg19: memref<2x1x32xf32, #tpu.memory_space<vmem>>, %arg20: memref<2x1x32xf32, #tpu.memory_space<vmem>>, %arg21: memref<32x128xbf16, #tpu.memory_space<vmem>>, %arg22: memref<1x128xf32, #tpu.memory_space<vmem>>, %arg23: memref<1x1x128xf32, #tpu.memory_space<vmem>>) attributes {dimension_semantics = [#tpu.dimension_semantics<parallel>], iteration_bounds = array<i64: 2>, scalar_prefetch = 0 : i64, scratch_operands = 0 : i64, tpu.core_type = #tpu.core_type<tc>, window_params = [{transform_indices = @transform_0, window_bounds = array<i64: 1, 8, 32>}, {transform_indices = @transform_1, window_bounds = array<i64: 1, 1, 8>}, {pipeline_mode = #tpu.pipeline_mode<synchronous>, transform_indices = @transform_2, window_bounds = array<i64: 1, 32>}, {pipeline_mode = #tpu.pipeline_mode<synchronous>, transform_indices = @transform_3, window_bounds = array<i64: 1, 32>}, {pipeline_mode = #tpu.pipeline_mode<synchronous>, transform_indices = @transform_4, window_bounds = array<i64: 2, 32, 32>}, {pipeline_mode = #tpu.pipeline_mode<synchronous>, transform_indices = @transform_5, window_bounds = array<i64: 2, 1, 32>}, {pipeline_mode = #tpu.pipeline_mode<synchronous>, transform_indices = @transform_6, window_bounds = array<i64: 2, 32, 32>}, {pipeline_mode = #tpu.pipeline_mode<synchronous>, transform_indices = @transform_7, window_bounds = array<i64: 2, 1, 32>}, {pipeline_mode = #tpu.pipeline_mode<synchronous>, transform_indices = @transform_8, window_bounds = array<i64: 2, 32, 32>}, {pipeline_mode = #tpu.pipeline_mode<synchronous>, transform_indices = @transform_9, window_bounds = array<i64: 2, 1, 32>}, {pipeline_mode = #tpu.pipeline_mode<synchronous>, transform_indices = @transform_10, window_bounds = array<i64: 2, 32, 32>}, {pipeline_mode = #tpu.pipeline_mode<synchronous>, transform_indices = @transform_11, window_bounds = array<i64: 2, 1, 32>}, {pipeline_mode = #tpu.pipeline_mode<synchronous>, transform_indices = @transform_12, window_bounds = array<i64: 2, 1, 32>}, {pipeline_mode = #tpu.pipeline_mode<synchronous>, transform_indices = @transform_13, window_bounds = array<i64: 2, 1, 32>}, {pipeline_mode = #tpu.pipeline_mode<synchronous>, transform_indices = @transform_14, window_bounds = array<i64: 2, 32, 64>}, {pipeline_mode = #tpu.pipeline_mode<synchronous>, transform_indices = @transform_15, window_bounds = array<i64: 2, 1, 64>}, {pipeline_mode = #tpu.pipeline_mode<synchronous>, transform_indices = @transform_16, window_bounds = array<i64: 2, 64, 32>}, {pipeline_mode = #tpu.pipeline_mode<synchronous>, transform_indices = @transform_17, window_bounds = array<i64: 2, 1, 32>}, {pipeline_mode = #tpu.pipeline_mode<synchronous>, transform_indices = @transform_18, window_bounds = array<i64: 2, 1, 32>}, {pipeline_mode = #tpu.pipeline_mode<synchronous>, transform_indices = @transform_19, window_bounds = array<i64: 2, 1, 32>}, {pipeline_mode = #tpu.pipeline_mode<synchronous>, transform_indices = @transform_20, window_bounds = array<i64: 32, 128>}, {pipeline_mode = #tpu.pipeline_mode<synchronous>, transform_indices = @transform_21, window_bounds = array<i64: 1, 128>}, {transform_indices = @transform_22, window_bounds = array<i64: 1, 1, 128>}]} {
    %cst = arith.constant 8.000000e+00 : f32
    %0 = math.sqrt %cst : f32
    %cst_0 = arith.constant 1.000000e+00 : f32
    %1 = arith.divf %cst_0, %0 : f32
    %c0 = arith.constant 0 : index
    %c0_1 = arith.constant 0 : index
    %c0_2 = arith.constant 0 : index
    %2 = vector.load %arg2[%c0, %c0_1, %c0_2] : memref<1x1x8xf32, #tpu.memory_space<vmem>>, vector<1x1x8xf32>
    %3 = vector.shape_cast %2 : vector<1x1x8xf32> to vector<1x8xf32>
    %cst_3 = arith.constant 1.000000e+00 : f32
    %4 = vector.broadcast %cst_3 : f32 to vector<1x8xf32>
    %5 = arith.subf %3, %4 : vector<1x8xf32>
    %cst_4 = arith.constant 1.000000e+09 : f32
    %6 = vector.broadcast %cst_4 : f32 to vector<1x8xf32>
    %7 = arith.mulf %5, %6 : vector<1x8xf32>
    %c0_5 = arith.constant 0 : index
    %c0_6 = arith.constant 0 : index
    %c0_7 = arith.constant 0 : index
    %8 = vector.load %arg1[%c0_5, %c0_6, %c0_7] : memref<1x8x32xf32, #tpu.memory_space<vmem>>, vector<1x8x32xf32>
    %9 = vector.shape_cast %8 : vector<1x8x32xf32> to vector<8x32xf32>
    %c0_8 = arith.constant 0 : index
    %c0_9 = arith.constant 0 : index
    %10 = vector.load %arg3[%c0_8, %c0_9] : memref<1x32xf32, #tpu.memory_space<vmem>>, vector<1x32xf32>
    %c0_10 = arith.constant 0 : index
    %c0_11 = arith.constant 0 : index
    %11 = vector.load %arg4[%c0_10, %c0_11] : memref<1x32xf32, #tpu.memory_space<vmem>>, vector<1x32xf32>
    %cst_12 = arith.constant dense<0.000000e+00> : vector<8xf32>
    %12 = vector.multi_reduction <add>, %9, %cst_12 [1] : vector<8x32xf32> to vector<8xf32>
    %13 = vector.shape_cast %12 : vector<8xf32> to vector<8x1xf32>
    %cst_13 = arith.constant 3.200000e+01 : f32
    %14 = vector.broadcast %cst_13 : f32 to vector<8x1xf32>
    %15 = arith.divf %13, %14 : vector<8x1xf32>
    %16 = vector.broadcast %15 : vector<8x1xf32> to vector<8x32xf32>
    %17 = arith.subf %9, %16 : vector<8x32xf32>
    %18 = arith.mulf %17, %17 : vector<8x32xf32>
    %cst_14 = arith.constant dense<0.000000e+00> : vector<8xf32>
    %19 = vector.multi_reduction <add>, %18, %cst_14 [1] : vector<8x32xf32> to vector<8xf32>
    %20 = vector.shape_cast %19 : vector<8xf32> to vector<8x1xf32>
    %cst_15 = arith.constant 3.200000e+01 : f32
    %21 = vector.broadcast %cst_15 : f32 to vector<8x1xf32>
    %22 = arith.divf %20, %21 : vector<8x1xf32>
    %23 = vector.broadcast %15 : vector<8x1xf32> to vector<8x32xf32>
    %24 = arith.subf %9, %23 : vector<8x32xf32>
    %cst_16 = arith.constant 9.99999974E-6 : f32
    %25 = vector.broadcast %cst_16 : f32 to vector<8x1xf32>
    %26 = arith.addf %22, %25 : vector<8x1xf32>
    %27 = math.rsqrt %26 : vector<8x1xf32>
    %28 = vector.broadcast %27 : vector<8x1xf32> to vector<8x32xf32>
    %29 = arith.mulf %24, %28 : vector<8x32xf32>
    %30 = vector.broadcast %10 : vector<1x32xf32> to vector<8x32xf32>
    %31 = arith.mulf %29, %30 : vector<8x32xf32>
    %32 = vector.broadcast %11 : vector<1x32xf32> to vector<8x32xf32>
    %33 = arith.addf %31, %32 : vector<8x32xf32>
    %c0_i32 = arith.constant 0 : i32
    %34 = arith.truncf %33 : vector<8x32xf32> to vector<8x32xbf16>
    %35 = arith.index_cast %c0_i32 : i32 to index
    %c0_17 = arith.constant 0 : index
    %c0_18 = arith.constant 0 : index
    %36 = vector.load %arg5[%35, %c0_17, %c0_18] : memref<2x32x32xbf16, #tpu.memory_space<vmem>>, vector<1x32x32xbf16>
    %37 = vector.shape_cast %36 : vector<1x32x32xbf16> to vector<32x32xbf16>
    %cst_19 = arith.constant dense<0.000000e+00> : vector<8x32xf32>
    %38 = tpu.matmul %34, %37, %cst_19 {dimension_numbers = #tpu.dot_dimension_numbers<[1], [0], [0], [1], [0, 0, 1, 1], [], []>} : vector<8x32xbf16>, vector<32x32xbf16>, vector<8x32xf32> -> vector<8x32xf32>
    %39 = arith.index_cast %c0_i32 : i32 to index
    %c0_20 = arith.constant 0 : index
    %c0_21 = arith.constant 0 : index
    %40 = vector.load %arg6[%39, %c0_20, %c0_21] : memref<2x1x32xf32, #tpu.memory_space<vmem>>, vector<1x1x32xf32>
    %41 = vector.shape_cast %40 : vector<1x1x32xf32> to vector<1x32xf32>
    %42 = vector.broadcast %41 : vector<1x32xf32> to vector<8x32xf32>
    %43 = arith.addf %38, %42 : vector<8x32xf32>
    %44 = arith.index_cast %c0_i32 : i32 to index
    %c0_22 = arith.constant 0 : index
    %c0_23 = arith.constant 0 : index
    %45 = vector.load %arg7[%44, %c0_22, %c0_23] : memref<2x32x32xbf16, #tpu.memory_space<vmem>>, vector<1x32x32xbf16>
    %46 = vector.shape_cast %45 : vector<1x32x32xbf16> to vector<32x32xbf16>
    %cst_24 = arith.constant dense<0.000000e+00> : vector<8x32xf32>
    %47 = tpu.matmul %34, %46, %cst_24 {dimension_numbers = #tpu.dot_dimension_numbers<[1], [0], [0], [1], [0, 0, 1, 1], [], []>} : vector<8x32xbf16>, vector<32x32xbf16>, vector<8x32xf32> -> vector<8x32xf32>
    %48 = arith.index_cast %c0_i32 : i32 to index
    %c0_25 = arith.constant 0 : index
    %c0_26 = arith.constant 0 : index
    %49 = vector.load %arg8[%48, %c0_25, %c0_26] : memref<2x1x32xf32, #tpu.memory_space<vmem>>, vector<1x1x32xf32>
    %50 = vector.shape_cast %49 : vector<1x1x32xf32> to vector<1x32xf32>
    %51 = vector.broadcast %50 : vector<1x32xf32> to vector<8x32xf32>
    %52 = arith.addf %47, %51 : vector<8x32xf32>
    %53 = arith.index_cast %c0_i32 : i32 to index
    %c0_27 = arith.constant 0 : index
    %c0_28 = arith.constant 0 : index
    %54 = vector.load %arg9[%53, %c0_27, %c0_28] : memref<2x32x32xbf16, #tpu.memory_space<vmem>>, vector<1x32x32xbf16>
    %55 = vector.shape_cast %54 : vector<1x32x32xbf16> to vector<32x32xbf16>
    %cst_29 = arith.constant dense<0.000000e+00> : vector<8x32xf32>
    %56 = tpu.matmul %34, %55, %cst_29 {dimension_numbers = #tpu.dot_dimension_numbers<[1], [0], [0], [1], [0, 0, 1, 1], [], []>} : vector<8x32xbf16>, vector<32x32xbf16>, vector<8x32xf32> -> vector<8x32xf32>
    %57 = arith.index_cast %c0_i32 : i32 to index
    %c0_30 = arith.constant 0 : index
    %c0_31 = arith.constant 0 : index
    %58 = vector.load %arg10[%57, %c0_30, %c0_31] : memref<2x1x32xf32, #tpu.memory_space<vmem>>, vector<1x1x32xf32>
    %59 = vector.shape_cast %58 : vector<1x1x32xf32> to vector<1x32xf32>
    %60 = vector.broadcast %59 : vector<1x32xf32> to vector<8x32xf32>
    %61 = arith.addf %56, %60 : vector<8x32xf32>
    %62 = arith.truncf %43 : vector<8x32xf32> to vector<8x32xbf16>
    %63 = arith.truncf %52 : vector<8x32xf32> to vector<8x32xbf16>
    %64 = arith.truncf %61 : vector<8x32xf32> to vector<8x32xbf16>
    %65 = vector.extract_strided_slice %62 {offsets = [0, 0], sizes = [8, 8], strides = [1, 1]} : vector<8x32xbf16> to vector<8x8xbf16>
    %66 = vector.extract_strided_slice %63 {offsets = [0, 0], sizes = [8, 8], strides = [1, 1]} : vector<8x32xbf16> to vector<8x8xbf16>
    "tpu.trace_start"() <{level = 10 : i32, message = "qd,kd->qk"}> : () -> ()
    %cst_32 = arith.constant dense<0.000000e+00> : vector<8x8xf32>
    %67 = tpu.matmul %65, %66, %cst_32 {dimension_numbers = #tpu.dot_dimension_numbers<[1], [1], [0], [0], [0, 0, 1, 0], [], []>} : vector<8x8xbf16>, vector<8x8xbf16>, vector<8x8xf32> -> vector<8x8xf32>
    "tpu.trace_stop"() : () -> ()
    %68 = vector.broadcast %1 : f32 to vector<8x8xf32>
    %69 = arith.mulf %67, %68 : vector<8x8xf32>
    %70 = vector.broadcast %7 : vector<1x8xf32> to vector<8x8xf32>
    %71 = arith.addf %69, %70 : vector<8x8xf32>
    %cst_33 = arith.constant dense<0xFF800000> : vector<8xf32>
    %72 = vector.multi_reduction <maximumf>, %71, %cst_33 [1] : vector<8x8xf32> to vector<8xf32>
    %73 = vector.shape_cast %72 : vector<8xf32> to vector<8x1xf32>
    %74 = vector.broadcast %73 : vector<8x1xf32> to vector<8x8xf32>
    %75 = arith.subf %71, %74 : vector<8x8xf32>
    %76 = math.exp %75 : vector<8x8xf32>
    %cst_34 = arith.constant dense<0.000000e+00> : vector<8xf32>
    %77 = vector.multi_reduction <add>, %76, %cst_34 [1] : vector<8x8xf32> to vector<8xf32>
    %78 = vector.shape_cast %77 : vector<8xf32> to vector<8x1xf32>
    %79 = tpu.reciprocal %78 {approx = true} : vector<8x1xf32> -> vector<8x1xf32>
    %80 = vector.broadcast %79 : vector<8x1xf32> to vector<8x8xf32>
    %81 = arith.mulf %76, %80 : vector<8x8xf32>
    %82 = arith.truncf %81 : vector<8x8xf32> to vector<8x8xbf16>
    %83 = vector.extract_strided_slice %64 {offsets = [0, 0], sizes = [8, 8], strides = [1, 1]} : vector<8x32xbf16> to vector<8x8xbf16>
    %cst_35 = arith.constant dense<0.000000e+00> : vector<8x8xf32>
    %84 = tpu.matmul %82, %83, %cst_35 {dimension_numbers = #tpu.dot_dimension_numbers<[1], [0], [0], [1], [0, 0, 1, 1], [], []>} : vector<8x8xbf16>, vector<8x8xbf16>, vector<8x8xf32> -> vector<8x8xf32>
    %85 = vector.extract_strided_slice %62 {offsets = [0, 8], sizes = [8, 8], strides = [1, 1]} : vector<8x32xbf16> to vector<8x8xbf16>
    %86 = vector.extract_strided_slice %63 {offsets = [0, 8], sizes = [8, 8], strides = [1, 1]} : vector<8x32xbf16> to vector<8x8xbf16>
    "tpu.trace_start"() <{level = 10 : i32, message = "qd,kd->qk"}> : () -> ()
    %cst_36 = arith.constant dense<0.000000e+00> : vector<8x8xf32>
    %87 = tpu.matmul %85, %86, %cst_36 {dimension_numbers = #tpu.dot_dimension_numbers<[1], [1], [0], [0], [0, 0, 1, 0], [], []>} : vector<8x8xbf16>, vector<8x8xbf16>, vector<8x8xf32> -> vector<8x8xf32>
    "tpu.trace_stop"() : () -> ()
    %88 = vector.broadcast %1 : f32 to vector<8x8xf32>
    %89 = arith.mulf %87, %88 : vector<8x8xf32>
    %90 = vector.broadcast %7 : vector<1x8xf32> to vector<8x8xf32>
    %91 = arith.addf %89, %90 : vector<8x8xf32>
    %cst_37 = arith.constant dense<0xFF800000> : vector<8xf32>
    %92 = vector.multi_reduction <maximumf>, %91, %cst_37 [1] : vector<8x8xf32> to vector<8xf32>
    %93 = vector.shape_cast %92 : vector<8xf32> to vector<8x1xf32>
    %94 = vector.broadcast %93 : vector<8x1xf32> to vector<8x8xf32>
    %95 = arith.subf %91, %94 : vector<8x8xf32>
    %96 = math.exp %95 : vector<8x8xf32>
    %cst_38 = arith.constant dense<0.000000e+00> : vector<8xf32>
    %97 = vector.multi_reduction <add>, %96, %cst_38 [1] : vector<8x8xf32> to vector<8xf32>
    %98 = vector.shape_cast %97 : vector<8xf32> to vector<8x1xf32>
    %99 = tpu.reciprocal %98 {approx = true} : vector<8x1xf32> -> vector<8x1xf32>
    %100 = vector.broadcast %99 : vector<8x1xf32> to vector<8x8xf32>
    %101 = arith.mulf %96, %100 : vector<8x8xf32>
    %102 = arith.truncf %101 : vector<8x8xf32> to vector<8x8xbf16>
    %103 = vector.extract_strided_slice %64 {offsets = [0, 8], sizes = [8, 8], strides = [1, 1]} : vector<8x32xbf16> to vector<8x8xbf16>
    %cst_39 = arith.constant dense<0.000000e+00> : vector<8x8xf32>
    %104 = tpu.matmul %102, %103, %cst_39 {dimension_numbers = #tpu.dot_dimension_numbers<[1], [0], [0], [1], [0, 0, 1, 1], [], []>} : vector<8x8xbf16>, vector<8x8xbf16>, vector<8x8xf32> -> vector<8x8xf32>
    %105 = vector.extract_strided_slice %62 {offsets = [0, 16], sizes = [8, 8], strides = [1, 1]} : vector<8x32xbf16> to vector<8x8xbf16>
    %106 = vector.extract_strided_slice %63 {offsets = [0, 16], sizes = [8, 8], strides = [1, 1]} : vector<8x32xbf16> to vector<8x8xbf16>
    "tpu.trace_start"() <{level = 10 : i32, message = "qd,kd->qk"}> : () -> ()
    %cst_40 = arith.constant dense<0.000000e+00> : vector<8x8xf32>
    %107 = tpu.matmul %105, %106, %cst_40 {dimension_numbers = #tpu.dot_dimension_numbers<[1], [1], [0], [0], [0, 0, 1, 0], [], []>} : vector<8x8xbf16>, vector<8x8xbf16>, vector<8x8xf32> -> vector<8x8xf32>
    "tpu.trace_stop"() : () -> ()
    %108 = vector.broadcast %1 : f32 to vector<8x8xf32>
    %109 = arith.mulf %107, %108 : vector<8x8xf32>
    %110 = vector.broadcast %7 : vector<1x8xf32> to vector<8x8xf32>
    %111 = arith.addf %109, %110 : vector<8x8xf32>
    %cst_41 = arith.constant dense<0xFF800000> : vector<8xf32>
    %112 = vector.multi_reduction <maximumf>, %111, %cst_41 [1] : vector<8x8xf32> to vector<8xf32>
    %113 = vector.shape_cast %112 : vector<8xf32> to vector<8x1xf32>
    %114 = vector.broadcast %113 : vector<8x1xf32> to vector<8x8xf32>
    %115 = arith.subf %111, %114 : vector<8x8xf32>
    %116 = math.exp %115 : vector<8x8xf32>
    %cst_42 = arith.constant dense<0.000000e+00> : vector<8xf32>
    %117 = vector.multi_reduction <add>, %116, %cst_42 [1] : vector<8x8xf32> to vector<8xf32>
    %118 = vector.shape_cast %117 : vector<8xf32> to vector<8x1xf32>
    %119 = tpu.reciprocal %118 {approx = true} : vector<8x1xf32> -> vector<8x1xf32>
    %120 = vector.broadcast %119 : vector<8x1xf32> to vector<8x8xf32>
    %121 = arith.mulf %116, %120 : vector<8x8xf32>
    %122 = arith.truncf %121 : vector<8x8xf32> to vector<8x8xbf16>
    %123 = vector.extract_strided_slice %64 {offsets = [0, 16], sizes = [8, 8], strides = [1, 1]} : vector<8x32xbf16> to vector<8x8xbf16>
    %cst_43 = arith.constant dense<0.000000e+00> : vector<8x8xf32>
    %124 = tpu.matmul %122, %123, %cst_43 {dimension_numbers = #tpu.dot_dimension_numbers<[1], [0], [0], [1], [0, 0, 1, 1], [], []>} : vector<8x8xbf16>, vector<8x8xbf16>, vector<8x8xf32> -> vector<8x8xf32>
    %125 = vector.extract_strided_slice %62 {offsets = [0, 24], sizes = [8, 8], strides = [1, 1]} : vector<8x32xbf16> to vector<8x8xbf16>
    %126 = vector.extract_strided_slice %63 {offsets = [0, 24], sizes = [8, 8], strides = [1, 1]} : vector<8x32xbf16> to vector<8x8xbf16>
    "tpu.trace_start"() <{level = 10 : i32, message = "qd,kd->qk"}> : () -> ()
    %cst_44 = arith.constant dense<0.000000e+00> : vector<8x8xf32>
    %127 = tpu.matmul %125, %126, %cst_44 {dimension_numbers = #tpu.dot_dimension_numbers<[1], [1], [0], [0], [0, 0, 1, 0], [], []>} : vector<8x8xbf16>, vector<8x8xbf16>, vector<8x8xf32> -> vector<8x8xf32>
    "tpu.trace_stop"() : () -> ()
    %128 = vector.broadcast %1 : f32 to vector<8x8xf32>
    %129 = arith.mulf %127, %128 : vector<8x8xf32>
    %130 = vector.broadcast %7 : vector<1x8xf32> to vector<8x8xf32>
    %131 = arith.addf %129, %130 : vector<8x8xf32>
    %cst_45 = arith.constant dense<0xFF800000> : vector<8xf32>
    %132 = vector.multi_reduction <maximumf>, %131, %cst_45 [1] : vector<8x8xf32> to vector<8xf32>
    %133 = vector.shape_cast %132 : vector<8xf32> to vector<8x1xf32>
    %134 = vector.broadcast %133 : vector<8x1xf32> to vector<8x8xf32>
    %135 = arith.subf %131, %134 : vector<8x8xf32>
    %136 = math.exp %135 : vector<8x8xf32>
    %cst_46 = arith.constant dense<0.000000e+00> : vector<8xf32>
    %137 = vector.multi_reduction <add>, %136, %cst_46 [1] : vector<8x8xf32> to vector<8xf32>
    %138 = vector.shape_cast %137 : vector<8xf32> to vector<8x1xf32>
    %139 = tpu.reciprocal %138 {approx = true} : vector<8x1xf32> -> vector<8x1xf32>
    %140 = vector.broadcast %139 : vector<8x1xf32> to vector<8x8xf32>
    %141 = arith.mulf %136, %140 : vector<8x8xf32>
    %142 = arith.truncf %141 : vector<8x8xf32> to vector<8x8xbf16>
    %143 = vector.extract_strided_slice %64 {offsets = [0, 24], sizes = [8, 8], strides = [1, 1]} : vector<8x32xbf16> to vector<8x8xbf16>
    %cst_47 = arith.constant dense<0.000000e+00> : vector<8x8xf32>
    %144 = tpu.matmul %142, %143, %cst_47 {dimension_numbers = #tpu.dot_dimension_numbers<[1], [0], [0], [1], [0, 0, 1, 1], [], []>} : vector<8x8xbf16>, vector<8x8xbf16>, vector<8x8xf32> -> vector<8x8xf32>
    %145 = tpu.concatenate %84, %104, %124, %144 in 1 : vector<8x8xf32>, vector<8x8xf32>, vector<8x8xf32>, vector<8x8xf32> -> vector<8x32xf32>
    %146 = arith.truncf %145 : vector<8x32xf32> to vector<8x32xbf16>
    %147 = arith.index_cast %c0_i32 : i32 to index
    %c0_48 = arith.constant 0 : index
    %c0_49 = arith.constant 0 : index
    %148 = vector.load %arg11[%147, %c0_48, %c0_49] : memref<2x32x32xbf16, #tpu.memory_space<vmem>>, vector<1x32x32xbf16>
    %149 = vector.shape_cast %148 : vector<1x32x32xbf16> to vector<32x32xbf16>
    %cst_50 = arith.constant dense<0.000000e+00> : vector<8x32xf32>
    %150 = tpu.matmul %146, %149, %cst_50 {dimension_numbers = #tpu.dot_dimension_numbers<[1], [0], [0], [1], [0, 0, 1, 1], [], []>} : vector<8x32xbf16>, vector<32x32xbf16>, vector<8x32xf32> -> vector<8x32xf32>
    %151 = arith.index_cast %c0_i32 : i32 to index
    %c0_51 = arith.constant 0 : index
    %c0_52 = arith.constant 0 : index
    %152 = vector.load %arg12[%151, %c0_51, %c0_52] : memref<2x1x32xf32, #tpu.memory_space<vmem>>, vector<1x1x32xf32>
    %153 = vector.shape_cast %152 : vector<1x1x32xf32> to vector<1x32xf32>
    %154 = vector.broadcast %153 : vector<1x32xf32> to vector<8x32xf32>
    %155 = arith.addf %150, %154 : vector<8x32xf32>
    %156 = arith.addf %33, %155 : vector<8x32xf32>
    %157 = arith.index_cast %c0_i32 : i32 to index
    %c0_53 = arith.constant 0 : index
    %c0_54 = arith.constant 0 : index
    %158 = vector.load %arg13[%157, %c0_53, %c0_54] : memref<2x1x32xf32, #tpu.memory_space<vmem>>, vector<1x1x32xf32>
    %159 = vector.shape_cast %158 : vector<1x1x32xf32> to vector<1x32xf32>
    %160 = arith.index_cast %c0_i32 : i32 to index
    %c0_55 = arith.constant 0 : index
    %c0_56 = arith.constant 0 : index
    %161 = vector.load %arg14[%160, %c0_55, %c0_56] : memref<2x1x32xf32, #tpu.memory_space<vmem>>, vector<1x1x32xf32>
    %162 = vector.shape_cast %161 : vector<1x1x32xf32> to vector<1x32xf32>
    %cst_57 = arith.constant dense<0.000000e+00> : vector<8xf32>
    %163 = vector.multi_reduction <add>, %156, %cst_57 [1] : vector<8x32xf32> to vector<8xf32>
    %164 = vector.shape_cast %163 : vector<8xf32> to vector<8x1xf32>
    %cst_58 = arith.constant 3.200000e+01 : f32
    %165 = vector.broadcast %cst_58 : f32 to vector<8x1xf32>
    %166 = arith.divf %164, %165 : vector<8x1xf32>
    %167 = vector.broadcast %166 : vector<8x1xf32> to vector<8x32xf32>
    %168 = arith.subf %156, %167 : vector<8x32xf32>
    %169 = arith.mulf %168, %168 : vector<8x32xf32>
    %cst_59 = arith.constant dense<0.000000e+00> : vector<8xf32>
    %170 = vector.multi_reduction <add>, %169, %cst_59 [1] : vector<8x32xf32> to vector<8xf32>
    %171 = vector.shape_cast %170 : vector<8xf32> to vector<8x1xf32>
    %cst_60 = arith.constant 3.200000e+01 : f32
    %172 = vector.broadcast %cst_60 : f32 to vector<8x1xf32>
    %173 = arith.divf %171, %172 : vector<8x1xf32>
    %174 = vector.broadcast %166 : vector<8x1xf32> to vector<8x32xf32>
    %175 = arith.subf %156, %174 : vector<8x32xf32>
    %cst_61 = arith.constant 9.99999974E-6 : f32
    %176 = vector.broadcast %cst_61 : f32 to vector<8x1xf32>
    %177 = arith.addf %173, %176 : vector<8x1xf32>
    %178 = math.rsqrt %177 : vector<8x1xf32>
    %179 = vector.broadcast %178 : vector<8x1xf32> to vector<8x32xf32>
    %180 = arith.mulf %175, %179 : vector<8x32xf32>
    %181 = vector.broadcast %159 : vector<1x32xf32> to vector<8x32xf32>
    %182 = arith.mulf %180, %181 : vector<8x32xf32>
    %183 = vector.broadcast %162 : vector<1x32xf32> to vector<8x32xf32>
    %184 = arith.addf %182, %183 : vector<8x32xf32>
    %185 = arith.truncf %184 : vector<8x32xf32> to vector<8x32xbf16>
    %186 = arith.index_cast %c0_i32 : i32 to index
    %c0_62 = arith.constant 0 : index
    %c0_63 = arith.constant 0 : index
    %187 = vector.load %arg15[%186, %c0_62, %c0_63] : memref<2x32x64xbf16, #tpu.memory_space<vmem>>, vector<1x32x64xbf16>
    %188 = vector.shape_cast %187 : vector<1x32x64xbf16> to vector<32x64xbf16>
    %cst_64 = arith.constant dense<0.000000e+00> : vector<8x64xf32>
    %189 = tpu.matmul %185, %188, %cst_64 {dimension_numbers = #tpu.dot_dimension_numbers<[1], [0], [0], [1], [0, 0, 1, 1], [], []>} : vector<8x32xbf16>, vector<32x64xbf16>, vector<8x64xf32> -> vector<8x64xf32>
    %190 = arith.index_cast %c0_i32 : i32 to index
    %c0_65 = arith.constant 0 : index
    %c0_66 = arith.constant 0 : index
    %191 = vector.load %arg16[%190, %c0_65, %c0_66] : memref<2x1x64xf32, #tpu.memory_space<vmem>>, vector<1x1x64xf32>
    %192 = vector.shape_cast %191 : vector<1x1x64xf32> to vector<1x64xf32>
    %193 = vector.broadcast %192 : vector<1x64xf32> to vector<8x64xf32>
    %194 = arith.addf %189, %193 : vector<8x64xf32>
    %195 = arith.mulf %194, %194 : vector<8x64xf32>
    %196 = arith.mulf %194, %195 : vector<8x64xf32>
    %cst_67 = arith.constant 4.471500e-02 : f32
    %197 = vector.broadcast %cst_67 : f32 to vector<8x64xf32>
    %198 = arith.mulf %197, %196 : vector<8x64xf32>
    %199 = arith.addf %194, %198 : vector<8x64xf32>
    %cst_68 = arith.constant 0.797884583 : f32
    %200 = vector.broadcast %cst_68 : f32 to vector<8x64xf32>
    %201 = arith.mulf %200, %199 : vector<8x64xf32>
    %202 = math.tanh %201 : vector<8x64xf32>
    %cst_69 = arith.constant 1.000000e+00 : f32
    %203 = vector.broadcast %cst_69 : f32 to vector<8x64xf32>
    %204 = arith.addf %203, %202 : vector<8x64xf32>
    %cst_70 = arith.constant 5.000000e-01 : f32
    %205 = vector.broadcast %cst_70 : f32 to vector<8x64xf32>
    %206 = arith.mulf %205, %204 : vector<8x64xf32>
    %207 = arith.mulf %194, %206 : vector<8x64xf32>
    %208 = arith.truncf %207 : vector<8x64xf32> to vector<8x64xbf16>
    %209 = arith.index_cast %c0_i32 : i32 to index
    %c0_71 = arith.constant 0 : index
    %c0_72 = arith.constant 0 : index
    %210 = vector.load %arg17[%209, %c0_71, %c0_72] : memref<2x64x32xbf16, #tpu.memory_space<vmem>>, vector<1x64x32xbf16>
    %211 = vector.shape_cast %210 : vector<1x64x32xbf16> to vector<64x32xbf16>
    %cst_73 = arith.constant dense<0.000000e+00> : vector<8x32xf32>
    %212 = tpu.matmul %208, %211, %cst_73 {dimension_numbers = #tpu.dot_dimension_numbers<[1], [0], [0], [1], [0, 0, 1, 1], [], []>} : vector<8x64xbf16>, vector<64x32xbf16>, vector<8x32xf32> -> vector<8x32xf32>
    %213 = arith.index_cast %c0_i32 : i32 to index
    %c0_74 = arith.constant 0 : index
    %c0_75 = arith.constant 0 : index
    %214 = vector.load %arg18[%213, %c0_74, %c0_75] : memref<2x1x32xf32, #tpu.memory_space<vmem>>, vector<1x1x32xf32>
    %215 = vector.shape_cast %214 : vector<1x1x32xf32> to vector<1x32xf32>
    %216 = vector.broadcast %215 : vector<1x32xf32> to vector<8x32xf32>
    %217 = arith.addf %212, %216 : vector<8x32xf32>
    %218 = arith.addf %184, %217 : vector<8x32xf32>
    %219 = arith.index_cast %c0_i32 : i32 to index
    %c0_76 = arith.constant 0 : index
    %c0_77 = arith.constant 0 : index
    %220 = vector.load %arg19[%219, %c0_76, %c0_77] : memref<2x1x32xf32, #tpu.memory_space<vmem>>, vector<1x1x32xf32>
    %221 = vector.shape_cast %220 : vector<1x1x32xf32> to vector<1x32xf32>
    %222 = arith.index_cast %c0_i32 : i32 to index
    %c0_78 = arith.constant 0 : index
    %c0_79 = arith.constant 0 : index
    %223 = vector.load %arg20[%222, %c0_78, %c0_79] : memref<2x1x32xf32, #tpu.memory_space<vmem>>, vector<1x1x32xf32>
    %224 = vector.shape_cast %223 : vector<1x1x32xf32> to vector<1x32xf32>
    %cst_80 = arith.constant dense<0.000000e+00> : vector<8xf32>
    %225 = vector.multi_reduction <add>, %218, %cst_80 [1] : vector<8x32xf32> to vector<8xf32>
    %226 = vector.shape_cast %225 : vector<8xf32> to vector<8x1xf32>
    %cst_81 = arith.constant 3.200000e+01 : f32
    %227 = vector.broadcast %cst_81 : f32 to vector<8x1xf32>
    %228 = arith.divf %226, %227 : vector<8x1xf32>
    %229 = vector.broadcast %228 : vector<8x1xf32> to vector<8x32xf32>
    %230 = arith.subf %218, %229 : vector<8x32xf32>
    %231 = arith.mulf %230, %230 : vector<8x32xf32>
    %cst_82 = arith.constant dense<0.000000e+00> : vector<8xf32>
    %232 = vector.multi_reduction <add>, %231, %cst_82 [1] : vector<8x32xf32> to vector<8xf32>
    %233 = vector.shape_cast %232 : vector<8xf32> to vector<8x1xf32>
    %cst_83 = arith.constant 3.200000e+01 : f32
    %234 = vector.broadcast %cst_83 : f32 to vector<8x1xf32>
    %235 = arith.divf %233, %234 : vector<8x1xf32>
    %236 = vector.broadcast %228 : vector<8x1xf32> to vector<8x32xf32>
    %237 = arith.subf %218, %236 : vector<8x32xf32>
    %cst_84 = arith.constant 9.99999974E-6 : f32
    %238 = vector.broadcast %cst_84 : f32 to vector<8x1xf32>
    %239 = arith.addf %235, %238 : vector<8x1xf32>
    %240 = math.rsqrt %239 : vector<8x1xf32>
    %241 = vector.broadcast %240 : vector<8x1xf32> to vector<8x32xf32>
    %242 = arith.mulf %237, %241 : vector<8x32xf32>
    %243 = vector.broadcast %221 : vector<1x32xf32> to vector<8x32xf32>
    %244 = arith.mulf %242, %243 : vector<8x32xf32>
    %245 = vector.broadcast %224 : vector<1x32xf32> to vector<8x32xf32>
    %246 = arith.addf %244, %245 : vector<8x32xf32>
    %c1_i32 = arith.constant 1 : i32
    %247 = arith.truncf %246 : vector<8x32xf32> to vector<8x32xbf16>
    %248 = arith.index_cast %c1_i32 : i32 to index
    %c0_85 = arith.constant 0 : index
    %c0_86 = arith.constant 0 : index
    %249 = vector.load %arg5[%248, %c0_85, %c0_86] : memref<2x32x32xbf16, #tpu.memory_space<vmem>>, vector<1x32x32xbf16>
    %250 = vector.shape_cast %249 : vector<1x32x32xbf16> to vector<32x32xbf16>
    %cst_87 = arith.constant dense<0.000000e+00> : vector<8x32xf32>
    %251 = tpu.matmul %247, %250, %cst_87 {dimension_numbers = #tpu.dot_dimension_numbers<[1], [0], [0], [1], [0, 0, 1, 1], [], []>} : vector<8x32xbf16>, vector<32x32xbf16>, vector<8x32xf32> -> vector<8x32xf32>
    %252 = arith.index_cast %c1_i32 : i32 to index
    %c0_88 = arith.constant 0 : index
    %c0_89 = arith.constant 0 : index
    %253 = vector.load %arg6[%252, %c0_88, %c0_89] : memref<2x1x32xf32, #tpu.memory_space<vmem>>, vector<1x1x32xf32>
    %254 = vector.shape_cast %253 : vector<1x1x32xf32> to vector<1x32xf32>
    %255 = vector.broadcast %254 : vector<1x32xf32> to vector<8x32xf32>
    %256 = arith.addf %251, %255 : vector<8x32xf32>
    %257 = arith.index_cast %c1_i32 : i32 to index
    %c0_90 = arith.constant 0 : index
    %c0_91 = arith.constant 0 : index
    %258 = vector.load %arg7[%257, %c0_90, %c0_91] : memref<2x32x32xbf16, #tpu.memory_space<vmem>>, vector<1x32x32xbf16>
    %259 = vector.shape_cast %258 : vector<1x32x32xbf16> to vector<32x32xbf16>
    %cst_92 = arith.constant dense<0.000000e+00> : vector<8x32xf32>
    %260 = tpu.matmul %247, %259, %cst_92 {dimension_numbers = #tpu.dot_dimension_numbers<[1], [0], [0], [1], [0, 0, 1, 1], [], []>} : vector<8x32xbf16>, vector<32x32xbf16>, vector<8x32xf32> -> vector<8x32xf32>
    %261 = arith.index_cast %c1_i32 : i32 to index
    %c0_93 = arith.constant 0 : index
    %c0_94 = arith.constant 0 : index
    %262 = vector.load %arg8[%261, %c0_93, %c0_94] : memref<2x1x32xf32, #tpu.memory_space<vmem>>, vector<1x1x32xf32>
    %263 = vector.shape_cast %262 : vector<1x1x32xf32> to vector<1x32xf32>
    %264 = vector.broadcast %263 : vector<1x32xf32> to vector<8x32xf32>
    %265 = arith.addf %260, %264 : vector<8x32xf32>
    %266 = arith.index_cast %c1_i32 : i32 to index
    %c0_95 = arith.constant 0 : index
    %c0_96 = arith.constant 0 : index
    %267 = vector.load %arg9[%266, %c0_95, %c0_96] : memref<2x32x32xbf16, #tpu.memory_space<vmem>>, vector<1x32x32xbf16>
    %268 = vector.shape_cast %267 : vector<1x32x32xbf16> to vector<32x32xbf16>
    %cst_97 = arith.constant dense<0.000000e+00> : vector<8x32xf32>
    %269 = tpu.matmul %247, %268, %cst_97 {dimension_numbers = #tpu.dot_dimension_numbers<[1], [0], [0], [1], [0, 0, 1, 1], [], []>} : vector<8x32xbf16>, vector<32x32xbf16>, vector<8x32xf32> -> vector<8x32xf32>
    %270 = arith.index_cast %c1_i32 : i32 to index
    %c0_98 = arith.constant 0 : index
    %c0_99 = arith.constant 0 : index
    %271 = vector.load %arg10[%270, %c0_98, %c0_99] : memref<2x1x32xf32, #tpu.memory_space<vmem>>, vector<1x1x32xf32>
    %272 = vector.shape_cast %271 : vector<1x1x32xf32> to vector<1x32xf32>
    %273 = vector.broadcast %272 : vector<1x32xf32> to vector<8x32xf32>
    %274 = arith.addf %269, %273 : vector<8x32xf32>
    %275 = arith.truncf %256 : vector<8x32xf32> to vector<8x32xbf16>
    %276 = arith.truncf %265 : vector<8x32xf32> to vector<8x32xbf16>
    %277 = arith.truncf %274 : vector<8x32xf32> to vector<8x32xbf16>
    %278 = vector.extract_strided_slice %275 {offsets = [0, 0], sizes = [8, 8], strides = [1, 1]} : vector<8x32xbf16> to vector<8x8xbf16>
    %279 = vector.extract_strided_slice %276 {offsets = [0, 0], sizes = [8, 8], strides = [1, 1]} : vector<8x32xbf16> to vector<8x8xbf16>
    "tpu.trace_start"() <{level = 10 : i32, message = "qd,kd->qk"}> : () -> ()
    %cst_100 = arith.constant dense<0.000000e+00> : vector<8x8xf32>
    %280 = tpu.matmul %278, %279, %cst_100 {dimension_numbers = #tpu.dot_dimension_numbers<[1], [1], [0], [0], [0, 0, 1, 0], [], []>} : vector<8x8xbf16>, vector<8x8xbf16>, vector<8x8xf32> -> vector<8x8xf32>
    "tpu.trace_stop"() : () -> ()
    %281 = vector.broadcast %1 : f32 to vector<8x8xf32>
    %282 = arith.mulf %280, %281 : vector<8x8xf32>
    %283 = vector.broadcast %7 : vector<1x8xf32> to vector<8x8xf32>
    %284 = arith.addf %282, %283 : vector<8x8xf32>
    %cst_101 = arith.constant dense<0xFF800000> : vector<8xf32>
    %285 = vector.multi_reduction <maximumf>, %284, %cst_101 [1] : vector<8x8xf32> to vector<8xf32>
    %286 = vector.shape_cast %285 : vector<8xf32> to vector<8x1xf32>
    %287 = vector.broadcast %286 : vector<8x1xf32> to vector<8x8xf32>
    %288 = arith.subf %284, %287 : vector<8x8xf32>
    %289 = math.exp %288 : vector<8x8xf32>
    %cst_102 = arith.constant dense<0.000000e+00> : vector<8xf32>
    %290 = vector.multi_reduction <add>, %289, %cst_102 [1] : vector<8x8xf32> to vector<8xf32>
    %291 = vector.shape_cast %290 : vector<8xf32> to vector<8x1xf32>
    %292 = tpu.reciprocal %291 {approx = true} : vector<8x1xf32> -> vector<8x1xf32>
    %293 = vector.broadcast %292 : vector<8x1xf32> to vector<8x8xf32>
    %294 = arith.mulf %289, %293 : vector<8x8xf32>
    %295 = arith.truncf %294 : vector<8x8xf32> to vector<8x8xbf16>
    %296 = vector.extract_strided_slice %277 {offsets = [0, 0], sizes = [8, 8], strides = [1, 1]} : vector<8x32xbf16> to vector<8x8xbf16>
    %cst_103 = arith.constant dense<0.000000e+00> : vector<8x8xf32>
    %297 = tpu.matmul %295, %296, %cst_103 {dimension_numbers = #tpu.dot_dimension_numbers<[1], [0], [0], [1], [0, 0, 1, 1], [], []>} : vector<8x8xbf16>, vector<8x8xbf16>, vector<8x8xf32> -> vector<8x8xf32>
    %298 = vector.extract_strided_slice %275 {offsets = [0, 8], sizes = [8, 8], strides = [1, 1]} : vector<8x32xbf16> to vector<8x8xbf16>
    %299 = vector.extract_strided_slice %276 {offsets = [0, 8], sizes = [8, 8], strides = [1, 1]} : vector<8x32xbf16> to vector<8x8xbf16>
    "tpu.trace_start"() <{level = 10 : i32, message = "qd,kd->qk"}> : () -> ()
    %cst_104 = arith.constant dense<0.000000e+00> : vector<8x8xf32>
    %300 = tpu.matmul %298, %299, %cst_104 {dimension_numbers = #tpu.dot_dimension_numbers<[1], [1], [0], [0], [0, 0, 1, 0], [], []>} : vector<8x8xbf16>, vector<8x8xbf16>, vector<8x8xf32> -> vector<8x8xf32>
    "tpu.trace_stop"() : () -> ()
    %301 = vector.broadcast %1 : f32 to vector<8x8xf32>
    %302 = arith.mulf %300, %301 : vector<8x8xf32>
    %303 = vector.broadcast %7 : vector<1x8xf32> to vector<8x8xf32>
    %304 = arith.addf %302, %303 : vector<8x8xf32>
    %cst_105 = arith.constant dense<0xFF800000> : vector<8xf32>
    %305 = vector.multi_reduction <maximumf>, %304, %cst_105 [1] : vector<8x8xf32> to vector<8xf32>
    %306 = vector.shape_cast %305 : vector<8xf32> to vector<8x1xf32>
    %307 = vector.broadcast %306 : vector<8x1xf32> to vector<8x8xf32>
    %308 = arith.subf %304, %307 : vector<8x8xf32>
    %309 = math.exp %308 : vector<8x8xf32>
    %cst_106 = arith.constant dense<0.000000e+00> : vector<8xf32>
    %310 = vector.multi_reduction <add>, %309, %cst_106 [1] : vector<8x8xf32> to vector<8xf32>
    %311 = vector.shape_cast %310 : vector<8xf32> to vector<8x1xf32>
    %312 = tpu.reciprocal %311 {approx = true} : vector<8x1xf32> -> vector<8x1xf32>
    %313 = vector.broadcast %312 : vector<8x1xf32> to vector<8x8xf32>
    %314 = arith.mulf %309, %313 : vector<8x8xf32>
    %315 = arith.truncf %314 : vector<8x8xf32> to vector<8x8xbf16>
    %316 = vector.extract_strided_slice %277 {offsets = [0, 8], sizes = [8, 8], strides = [1, 1]} : vector<8x32xbf16> to vector<8x8xbf16>
    %cst_107 = arith.constant dense<0.000000e+00> : vector<8x8xf32>
    %317 = tpu.matmul %315, %316, %cst_107 {dimension_numbers = #tpu.dot_dimension_numbers<[1], [0], [0], [1], [0, 0, 1, 1], [], []>} : vector<8x8xbf16>, vector<8x8xbf16>, vector<8x8xf32> -> vector<8x8xf32>
    %318 = vector.extract_strided_slice %275 {offsets = [0, 16], sizes = [8, 8], strides = [1, 1]} : vector<8x32xbf16> to vector<8x8xbf16>
    %319 = vector.extract_strided_slice %276 {offsets = [0, 16], sizes = [8, 8], strides = [1, 1]} : vector<8x32xbf16> to vector<8x8xbf16>
    "tpu.trace_start"() <{level = 10 : i32, message = "qd,kd->qk"}> : () -> ()
    %cst_108 = arith.constant dense<0.000000e+00> : vector<8x8xf32>
    %320 = tpu.matmul %318, %319, %cst_108 {dimension_numbers = #tpu.dot_dimension_numbers<[1], [1], [0], [0], [0, 0, 1, 0], [], []>} : vector<8x8xbf16>, vector<8x8xbf16>, vector<8x8xf32> -> vector<8x8xf32>
    "tpu.trace_stop"() : () -> ()
    %321 = vector.broadcast %1 : f32 to vector<8x8xf32>
    %322 = arith.mulf %320, %321 : vector<8x8xf32>
    %323 = vector.broadcast %7 : vector<1x8xf32> to vector<8x8xf32>
    %324 = arith.addf %322, %323 : vector<8x8xf32>
    %cst_109 = arith.constant dense<0xFF800000> : vector<8xf32>
    %325 = vector.multi_reduction <maximumf>, %324, %cst_109 [1] : vector<8x8xf32> to vector<8xf32>
    %326 = vector.shape_cast %325 : vector<8xf32> to vector<8x1xf32>
    %327 = vector.broadcast %326 : vector<8x1xf32> to vector<8x8xf32>
    %328 = arith.subf %324, %327 : vector<8x8xf32>
    %329 = math.exp %328 : vector<8x8xf32>
    %cst_110 = arith.constant dense<0.000000e+00> : vector<8xf32>
    %330 = vector.multi_reduction <add>, %329, %cst_110 [1] : vector<8x8xf32> to vector<8xf32>
    %331 = vector.shape_cast %330 : vector<8xf32> to vector<8x1xf32>
    %332 = tpu.reciprocal %331 {approx = true} : vector<8x1xf32> -> vector<8x1xf32>
    %333 = vector.broadcast %332 : vector<8x1xf32> to vector<8x8xf32>
    %334 = arith.mulf %329, %333 : vector<8x8xf32>
    %335 = arith.truncf %334 : vector<8x8xf32> to vector<8x8xbf16>
    %336 = vector.extract_strided_slice %277 {offsets = [0, 16], sizes = [8, 8], strides = [1, 1]} : vector<8x32xbf16> to vector<8x8xbf16>
    %cst_111 = arith.constant dense<0.000000e+00> : vector<8x8xf32>
    %337 = tpu.matmul %335, %336, %cst_111 {dimension_numbers = #tpu.dot_dimension_numbers<[1], [0], [0], [1], [0, 0, 1, 1], [], []>} : vector<8x8xbf16>, vector<8x8xbf16>, vector<8x8xf32> -> vector<8x8xf32>
    %338 = vector.extract_strided_slice %275 {offsets = [0, 24], sizes = [8, 8], strides = [1, 1]} : vector<8x32xbf16> to vector<8x8xbf16>
    %339 = vector.extract_strided_slice %276 {offsets = [0, 24], sizes = [8, 8], strides = [1, 1]} : vector<8x32xbf16> to vector<8x8xbf16>
    "tpu.trace_start"() <{level = 10 : i32, message = "qd,kd->qk"}> : () -> ()
    %cst_112 = arith.constant dense<0.000000e+00> : vector<8x8xf32>
    %340 = tpu.matmul %338, %339, %cst_112 {dimension_numbers = #tpu.dot_dimension_numbers<[1], [1], [0], [0], [0, 0, 1, 0], [], []>} : vector<8x8xbf16>, vector<8x8xbf16>, vector<8x8xf32> -> vector<8x8xf32>
    "tpu.trace_stop"() : () -> ()
    %341 = vector.broadcast %1 : f32 to vector<8x8xf32>
    %342 = arith.mulf %340, %341 : vector<8x8xf32>
    %343 = vector.broadcast %7 : vector<1x8xf32> to vector<8x8xf32>
    %344 = arith.addf %342, %343 : vector<8x8xf32>
    %cst_113 = arith.constant dense<0xFF800000> : vector<8xf32>
    %345 = vector.multi_reduction <maximumf>, %344, %cst_113 [1] : vector<8x8xf32> to vector<8xf32>
    %346 = vector.shape_cast %345 : vector<8xf32> to vector<8x1xf32>
    %347 = vector.broadcast %346 : vector<8x1xf32> to vector<8x8xf32>
    %348 = arith.subf %344, %347 : vector<8x8xf32>
    %349 = math.exp %348 : vector<8x8xf32>
    %cst_114 = arith.constant dense<0.000000e+00> : vector<8xf32>
    %350 = vector.multi_reduction <add>, %349, %cst_114 [1] : vector<8x8xf32> to vector<8xf32>
    %351 = vector.shape_cast %350 : vector<8xf32> to vector<8x1xf32>
    %352 = tpu.reciprocal %351 {approx = true} : vector<8x1xf32> -> vector<8x1xf32>
    %353 = vector.broadcast %352 : vector<8x1xf32> to vector<8x8xf32>
    %354 = arith.mulf %349, %353 : vector<8x8xf32>
    %355 = arith.truncf %354 : vector<8x8xf32> to vector<8x8xbf16>
    %356 = vector.extract_strided_slice %277 {offsets = [0, 24], sizes = [8, 8], strides = [1, 1]} : vector<8x32xbf16> to vector<8x8xbf16>
    %cst_115 = arith.constant dense<0.000000e+00> : vector<8x8xf32>
    %357 = tpu.matmul %355, %356, %cst_115 {dimension_numbers = #tpu.dot_dimension_numbers<[1], [0], [0], [1], [0, 0, 1, 1], [], []>} : vector<8x8xbf16>, vector<8x8xbf16>, vector<8x8xf32> -> vector<8x8xf32>
    %358 = tpu.concatenate %297, %317, %337, %357 in 1 : vector<8x8xf32>, vector<8x8xf32>, vector<8x8xf32>, vector<8x8xf32> -> vector<8x32xf32>
    %359 = arith.truncf %358 : vector<8x32xf32> to vector<8x32xbf16>
    %360 = arith.index_cast %c1_i32 : i32 to index
    %c0_116 = arith.constant 0 : index
    %c0_117 = arith.constant 0 : index
    %361 = vector.load %arg11[%360, %c0_116, %c0_117] : memref<2x32x32xbf16, #tpu.memory_space<vmem>>, vector<1x32x32xbf16>
    %362 = vector.shape_cast %361 : vector<1x32x32xbf16> to vector<32x32xbf16>
    %cst_118 = arith.constant dense<0.000000e+00> : vector<8x32xf32>
    %363 = tpu.matmul %359, %362, %cst_118 {dimension_numbers = #tpu.dot_dimension_numbers<[1], [0], [0], [1], [0, 0, 1, 1], [], []>} : vector<8x32xbf16>, vector<32x32xbf16>, vector<8x32xf32> -> vector<8x32xf32>
    %364 = arith.index_cast %c1_i32 : i32 to index
    %c0_119 = arith.constant 0 : index
    %c0_120 = arith.constant 0 : index
    %365 = vector.load %arg12[%364, %c0_119, %c0_120] : memref<2x1x32xf32, #tpu.memory_space<vmem>>, vector<1x1x32xf32>
    %366 = vector.shape_cast %365 : vector<1x1x32xf32> to vector<1x32xf32>
    %367 = vector.broadcast %366 : vector<1x32xf32> to vector<8x32xf32>
    %368 = arith.addf %363, %367 : vector<8x32xf32>
    %369 = arith.addf %246, %368 : vector<8x32xf32>
    %370 = arith.index_cast %c1_i32 : i32 to index
    %c0_121 = arith.constant 0 : index
    %c0_122 = arith.constant 0 : index
    %371 = vector.load %arg13[%370, %c0_121, %c0_122] : memref<2x1x32xf32, #tpu.memory_space<vmem>>, vector<1x1x32xf32>
    %372 = vector.shape_cast %371 : vector<1x1x32xf32> to vector<1x32xf32>
    %373 = arith.index_cast %c1_i32 : i32 to index
    %c0_123 = arith.constant 0 : index
    %c0_124 = arith.constant 0 : index
    %374 = vector.load %arg14[%373, %c0_123, %c0_124] : memref<2x1x32xf32, #tpu.memory_space<vmem>>, vector<1x1x32xf32>
    %375 = vector.shape_cast %374 : vector<1x1x32xf32> to vector<1x32xf32>
    %cst_125 = arith.constant dense<0.000000e+00> : vector<8xf32>
    %376 = vector.multi_reduction <add>, %369, %cst_125 [1] : vector<8x32xf32> to vector<8xf32>
    %377 = vector.shape_cast %376 : vector<8xf32> to vector<8x1xf32>
    %cst_126 = arith.constant 3.200000e+01 : f32
    %378 = vector.broadcast %cst_126 : f32 to vector<8x1xf32>
    %379 = arith.divf %377, %378 : vector<8x1xf32>
    %380 = vector.broadcast %379 : vector<8x1xf32> to vector<8x32xf32>
    %381 = arith.subf %369, %380 : vector<8x32xf32>
    %382 = arith.mulf %381, %381 : vector<8x32xf32>
    %cst_127 = arith.constant dense<0.000000e+00> : vector<8xf32>
    %383 = vector.multi_reduction <add>, %382, %cst_127 [1] : vector<8x32xf32> to vector<8xf32>
    %384 = vector.shape_cast %383 : vector<8xf32> to vector<8x1xf32>
    %cst_128 = arith.constant 3.200000e+01 : f32
    %385 = vector.broadcast %cst_128 : f32 to vector<8x1xf32>
    %386 = arith.divf %384, %385 : vector<8x1xf32>
    %387 = vector.broadcast %379 : vector<8x1xf32> to vector<8x32xf32>
    %388 = arith.subf %369, %387 : vector<8x32xf32>
    %cst_129 = arith.constant 9.99999974E-6 : f32
    %389 = vector.broadcast %cst_129 : f32 to vector<8x1xf32>
    %390 = arith.addf %386, %389 : vector<8x1xf32>
    %391 = math.rsqrt %390 : vector<8x1xf32>
    %392 = vector.broadcast %391 : vector<8x1xf32> to vector<8x32xf32>
    %393 = arith.mulf %388, %392 : vector<8x32xf32>
    %394 = vector.broadcast %372 : vector<1x32xf32> to vector<8x32xf32>
    %395 = arith.mulf %393, %394 : vector<8x32xf32>
    %396 = vector.broadcast %375 : vector<1x32xf32> to vector<8x32xf32>
    %397 = arith.addf %395, %396 : vector<8x32xf32>
    %398 = arith.truncf %397 : vector<8x32xf32> to vector<8x32xbf16>
    %399 = arith.index_cast %c1_i32 : i32 to index
    %c0_130 = arith.constant 0 : index
    %c0_131 = arith.constant 0 : index
    %400 = vector.load %arg15[%399, %c0_130, %c0_131] : memref<2x32x64xbf16, #tpu.memory_space<vmem>>, vector<1x32x64xbf16>
    %401 = vector.shape_cast %400 : vector<1x32x64xbf16> to vector<32x64xbf16>
    %cst_132 = arith.constant dense<0.000000e+00> : vector<8x64xf32>
    %402 = tpu.matmul %398, %401, %cst_132 {dimension_numbers = #tpu.dot_dimension_numbers<[1], [0], [0], [1], [0, 0, 1, 1], [], []>} : vector<8x32xbf16>, vector<32x64xbf16>, vector<8x64xf32> -> vector<8x64xf32>
    %403 = arith.index_cast %c1_i32 : i32 to index
    %c0_133 = arith.constant 0 : index
    %c0_134 = arith.constant 0 : index
    %404 = vector.load %arg16[%403, %c0_133, %c0_134] : memref<2x1x64xf32, #tpu.memory_space<vmem>>, vector<1x1x64xf32>
    %405 = vector.shape_cast %404 : vector<1x1x64xf32> to vector<1x64xf32>
    %406 = vector.broadcast %405 : vector<1x64xf32> to vector<8x64xf32>
    %407 = arith.addf %402, %406 : vector<8x64xf32>
    %408 = arith.mulf %407, %407 : vector<8x64xf32>
    %409 = arith.mulf %407, %408 : vector<8x64xf32>
    %cst_135 = arith.constant 4.471500e-02 : f32
    %410 = vector.broadcast %cst_135 : f32 to vector<8x64xf32>
    %411 = arith.mulf %410, %409 : vector<8x64xf32>
    %412 = arith.addf %407, %411 : vector<8x64xf32>
    %cst_136 = arith.constant 0.797884583 : f32
    %413 = vector.broadcast %cst_136 : f32 to vector<8x64xf32>
    %414 = arith.mulf %413, %412 : vector<8x64xf32>
    %415 = math.tanh %414 : vector<8x64xf32>
    %cst_137 = arith.constant 1.000000e+00 : f32
    %416 = vector.broadcast %cst_137 : f32 to vector<8x64xf32>
    %417 = arith.addf %416, %415 : vector<8x64xf32>
    %cst_138 = arith.constant 5.000000e-01 : f32
    %418 = vector.broadcast %cst_138 : f32 to vector<8x64xf32>
    %419 = arith.mulf %418, %417 : vector<8x64xf32>
    %420 = arith.mulf %407, %419 : vector<8x64xf32>
    %421 = arith.truncf %420 : vector<8x64xf32> to vector<8x64xbf16>
    %422 = arith.index_cast %c1_i32 : i32 to index
    %c0_139 = arith.constant 0 : index
    %c0_140 = arith.constant 0 : index
    %423 = vector.load %arg17[%422, %c0_139, %c0_140] : memref<2x64x32xbf16, #tpu.memory_space<vmem>>, vector<1x64x32xbf16>
    %424 = vector.shape_cast %423 : vector<1x64x32xbf16> to vector<64x32xbf16>
    %cst_141 = arith.constant dense<0.000000e+00> : vector<8x32xf32>
    %425 = tpu.matmul %421, %424, %cst_141 {dimension_numbers = #tpu.dot_dimension_numbers<[1], [0], [0], [1], [0, 0, 1, 1], [], []>} : vector<8x64xbf16>, vector<64x32xbf16>, vector<8x32xf32> -> vector<8x32xf32>
    %426 = arith.index_cast %c1_i32 : i32 to index
    %c0_142 = arith.constant 0 : index
    %c0_143 = arith.constant 0 : index
    %427 = vector.load %arg18[%426, %c0_142, %c0_143] : memref<2x1x32xf32, #tpu.memory_space<vmem>>, vector<1x1x32xf32>
    %428 = vector.shape_cast %427 : vector<1x1x32xf32> to vector<1x32xf32>
    %429 = vector.broadcast %428 : vector<1x32xf32> to vector<8x32xf32>
    %430 = arith.addf %425, %429 : vector<8x32xf32>
    %431 = arith.addf %397, %430 : vector<8x32xf32>
    %432 = arith.index_cast %c1_i32 : i32 to index
    %c0_144 = arith.constant 0 : index
    %c0_145 = arith.constant 0 : index
    %433 = vector.load %arg19[%432, %c0_144, %c0_145] : memref<2x1x32xf32, #tpu.memory_space<vmem>>, vector<1x1x32xf32>
    %434 = vector.shape_cast %433 : vector<1x1x32xf32> to vector<1x32xf32>
    %435 = arith.index_cast %c1_i32 : i32 to index
    %c0_146 = arith.constant 0 : index
    %c0_147 = arith.constant 0 : index
    %436 = vector.load %arg20[%435, %c0_146, %c0_147] : memref<2x1x32xf32, #tpu.memory_space<vmem>>, vector<1x1x32xf32>
    %437 = vector.shape_cast %436 : vector<1x1x32xf32> to vector<1x32xf32>
    %cst_148 = arith.constant dense<0.000000e+00> : vector<8xf32>
    %438 = vector.multi_reduction <add>, %431, %cst_148 [1] : vector<8x32xf32> to vector<8xf32>
    %439 = vector.shape_cast %438 : vector<8xf32> to vector<8x1xf32>
    %cst_149 = arith.constant 3.200000e+01 : f32
    %440 = vector.broadcast %cst_149 : f32 to vector<8x1xf32>
    %441 = arith.divf %439, %440 : vector<8x1xf32>
    %442 = vector.broadcast %441 : vector<8x1xf32> to vector<8x32xf32>
    %443 = arith.subf %431, %442 : vector<8x32xf32>
    %444 = arith.mulf %443, %443 : vector<8x32xf32>
    %cst_150 = arith.constant dense<0.000000e+00> : vector<8xf32>
    %445 = vector.multi_reduction <add>, %444, %cst_150 [1] : vector<8x32xf32> to vector<8xf32>
    %446 = vector.shape_cast %445 : vector<8xf32> to vector<8x1xf32>
    %cst_151 = arith.constant 3.200000e+01 : f32
    %447 = vector.broadcast %cst_151 : f32 to vector<8x1xf32>
    %448 = arith.divf %446, %447 : vector<8x1xf32>
    %449 = vector.broadcast %441 : vector<8x1xf32> to vector<8x32xf32>
    %450 = arith.subf %431, %449 : vector<8x32xf32>
    %cst_152 = arith.constant 9.99999974E-6 : f32
    %451 = vector.broadcast %cst_152 : f32 to vector<8x1xf32>
    %452 = arith.addf %448, %451 : vector<8x1xf32>
    %453 = math.rsqrt %452 : vector<8x1xf32>
    %454 = vector.broadcast %453 : vector<8x1xf32> to vector<8x32xf32>
    %455 = arith.mulf %450, %454 : vector<8x32xf32>
    %456 = vector.broadcast %434 : vector<1x32xf32> to vector<8x32xf32>
    %457 = arith.mulf %455, %456 : vector<8x32xf32>
    %458 = vector.broadcast %437 : vector<1x32xf32> to vector<8x32xf32>
    %459 = arith.addf %457, %458 : vector<8x32xf32>
    %c2_i32 = arith.constant 2 : i32
    %460 = vector.extract_strided_slice %459 {offsets = [0, 0], sizes = [1, 32], strides = [1, 1]} : vector<8x32xf32> to vector<1x32xf32>
    %cst_153 = arith.constant 0.000000e+00 : f32
    %461 = vector.broadcast %cst_153 : f32 to vector<1x32xf32>
    %462 = arith.maximumf %460, %461 : vector<1x32xf32>
    %463 = arith.truncf %462 : vector<1x32xf32> to vector<1x32xbf16>
    %c0_154 = arith.constant 0 : index
    %c0_155 = arith.constant 0 : index
    %464 = vector.load %arg21[%c0_154, %c0_155] : memref<32x128xbf16, #tpu.memory_space<vmem>>, vector<32x128xbf16>
    %cst_156 = arith.constant dense<0.000000e+00> : vector<1x128xf32>
    %465 = tpu.matmul %463, %464, %cst_156 {dimension_numbers = #tpu.dot_dimension_numbers<[1], [0], [0], [1], [0, 0, 1, 1], [], []>} : vector<1x32xbf16>, vector<32x128xbf16>, vector<1x128xf32> -> vector<1x128xf32>
    %c0_157 = arith.constant 0 : index
    %c0_158 = arith.constant 0 : index
    %466 = vector.load %arg22[%c0_157, %c0_158] : memref<1x128xf32, #tpu.memory_space<vmem>>, vector<1x128xf32>
    %467 = arith.addf %465, %466 : vector<1x128xf32>
    %c0_159 = arith.constant 0 : index
    %c0_160 = arith.constant 0 : index
    %c0_161 = arith.constant 0 : index
    %468 = vector.load %arg23[%c0_159, %c0_160, %c0_161] : memref<1x1x128xf32, #tpu.memory_space<vmem>>, vector<1x1x128xf32>
    %469 = vector.shape_cast %468 : vector<1x1x128xf32> to vector<1x128xf32>
    %470 = vector.shape_cast %467 : vector<1x128xf32> to vector<1x1x128xf32>
    tpu.vector_store %arg23[%c0_159, %c0_160, %c0_161], %470 {strides = array<i32>} : memref<1x1x128xf32, #tpu.memory_space<vmem>>, vector<1x1x128xf32>,
    return
  }
  func.func @transform_0(%arg0: i32) -> (i32, i32, i32) {
    %c0_i32 = arith.constant 0 : i32
    %c0_i32_0 = arith.constant 0 : i32
    %c0_i32_1 = arith.constant 0 : i32
    return %arg0, %c0_i32, %c0_i32_0 : i32, i32, i32
  }
  func.func @transform_1(%arg0: i32) -> (i32, i32, i32) {
    %c0_i32 = arith.constant 0 : i32
    %c0_i32_0 = arith.constant 0 : i32
    %c0_i32_1 = arith.constant 0 : i32
    return %arg0, %c0_i32, %c0_i32_0 : i32, i32, i32
  }
  func.func @transform_2(%arg0: i32) -> (i32, i32) {
    %c0_i32 = arith.constant 0 : i32
    %c0_i32_0 = arith.constant 0 : i32
    %c0_i32_1 = arith.constant 0 : i32
    return %c0_i32, %c0_i32_0 : i32, i32
  }
  func.func @transform_3(%arg0: i32) -> (i32, i32) {
    %c0_i32 = arith.constant 0 : i32
    %c0_i32_0 = arith.constant 0 : i32
    %c0_i32_1 = arith.constant 0 : i32
    return %c0_i32, %c0_i32_0 : i32, i32
  }
  func.func @transform_4(%arg0: i32) -> (i32, i32, i32) {
    %c0_i32 = arith.constant 0 : i32
    %c0_i32_0 = arith.constant 0 : i32
    %c0_i32_1 = arith.constant 0 : i32
    %c0_i32_2 = arith.constant 0 : i32
    return %c0_i32, %c0_i32_0, %c0_i32_1 : i32, i32, i32
  }
  func.func @transform_5(%arg0: i32) -> (i32, i32, i32) {
    %c0_i32 = arith.constant 0 : i32
    %c0_i32_0 = arith.constant 0 : i32
    %c0_i32_1 = arith.constant 0 : i32
    %c0_i32_2 = arith.constant 0 : i32
    return %c0_i32, %c0_i32_0, %c0_i32_1 : i32, i32, i32
  }
  func.func @transform_6(%arg0: i32) -> (i32, i32, i32) {
    %c0_i32 = arith.constant 0 : i32
    %c0_i32_0 = arith.constant 0 : i32
    %c0_i32_1 = arith.constant 0 : i32
    %c0_i32_2 = arith.constant 0 : i32
    return %c0_i32, %c0_i32_0, %c0_i32_1 : i32, i32, i32
  }
  func.func @transform_7(%arg0: i32) -> (i32, i32, i32) {
    %c0_i32 = arith.constant 0 : i32
    %c0_i32_0 = arith.constant 0 : i32
    %c0_i32_1 = arith.constant 0 : i32
    %c0_i32_2 = arith.constant 0 : i32
    return %c0_i32, %c0_i32_0, %c0_i32_1 : i32, i32, i32
  }
  func.func @transform_8(%arg0: i32) -> (i32, i32, i32) {
    %c0_i32 = arith.constant 0 : i32
    %c0_i32_0 = arith.constant 0 : i32
    %c0_i32_1 = arith.constant 0 : i32
    %c0_i32_2 = arith.constant 0 : i32
    return %c0_i32, %c0_i32_0, %c0_i32_1 : i32, i32, i32
  }
  func.func @transform_9(%arg0: i32) -> (i32, i32, i32) {
    %c0_i32 = arith.constant 0 : i32
    %c0_i32_0 = arith.constant 0 : i32
    %c0_i32_1 = arith.constant 0 : i32
    %c0_i32_2 = arith.constant 0 : i32
    return %c0_i32, %c0_i32_0, %c0_i32_1 : i32, i32, i32
  }
  func.func @transform_10(%arg0: i32) -> (i32, i32, i32) {
    %c0_i32 = arith.constant 0 : i32
    %c0_i32_0 = arith.constant 0 : i32
    %c0_i32_1 = arith.constant 0 : i32
    %c0_i32_2 = arith.constant 0 : i32
    return %c0_i32, %c0_i32_0, %c0_i32_1 : i32, i32, i32
  }
  func.func @transform_11(%arg0: i32) -> (i32, i32, i32) {
    %c0_i32 = arith.constant 0 : i32
    %c0_i32_0 = arith.constant 0 : i32
    %c0_i32_1 = arith.constant 0 : i32
    %c0_i32_2 = arith.constant 0 : i32
    return %c0_i32, %c0_i32_0, %c0_i32_1 : i32, i32, i32
  }
  func.func @transform_12(%arg0: i32) -> (i32, i32, i32) {
    %c0_i32 = arith.constant 0 : i32
    %c0_i32_0 = arith.constant 0 : i32
    %c0_i32_1 = arith.constant 0 : i32
    %c0_i32_2 = arith.constant 0 : i32
    return %c0_i32, %c0_i32_0, %c0_i32_1 : i32, i32, i32
  }
  func.func @transform_13(%arg0: i32) -> (i32, i32, i32) {
    %c0_i32 = arith.constant 0 : i32
    %c0_i32_0 = arith.constant 0 : i32
    %c0_i32_1 = arith.constant 0 : i32
    %c0_i32_2 = arith.constant 0 : i32
    return %c0_i32, %c0_i32_0, %c0_i32_1 : i32, i32, i32
  }
  func.func @transform_14(%arg0: i32) -> (i32, i32, i32) {
    %c0_i32 = arith.constant 0 : i32
    %c0_i32_0 = arith.constant 0 : i32
    %c0_i32_1 = arith.constant 0 : i32
    %c0_i32_2 = arith.constant 0 : i32
    return %c0_i32, %c0_i32_0, %c0_i32_1 : i32, i32, i32
  }
  func.func @transform_15(%arg0: i32) -> (i32, i32, i32) {
    %c0_i32 = arith.constant 0 : i32
    %c0_i32_0 = arith.constant 0 : i32
    %c0_i32_1 = arith.constant 0 : i32
    %c0_i32_2 = arith.constant 0 : i32
    return %c0_i32, %c0_i32_0, %c0_i32_1 : i32, i32, i32
  }
  func.func @transform_16(%arg0: i32) -> (i32, i32, i32) {
    %c0_i32 = arith.constant 0 : i32
    %c0_i32_0 = arith.constant 0 : i32
    %c0_i32_1 = arith.constant 0 : i32
    %c0_i32_2 = arith.constant 0 : i32
    return %c0_i32, %c0_i32_0, %c0_i32_1 : i32, i32, i32
  }
  func.func @transform_17(%arg0: i32) -> (i32, i32, i32) {
    %c0_i32 = arith.constant 0 : i32
    %c0_i32_0 = arith.constant 0 : i32
    %c0_i32_1 = arith.constant 0 : i32
    %c0_i32_2 = arith.constant 0 : i32
    return %c0_i32, %c0_i32_0, %c0_i32_1 : i32, i32, i32
  }
  func.func @transform_18(%arg0: i32) -> (i32, i32, i32) {
    %c0_i32 = arith.constant 0 : i32
    %c0_i32_0 = arith.constant 0 : i32
    %c0_i32_1 = arith.constant 0 : i32
    %c0_i32_2 = arith.constant 0 : i32
    return %c0_i32, %c0_i32_0, %c0_i32_1 : i32, i32, i32
  }
  func.func @transform_19(%arg0: i32) -> (i32, i32, i32) {
    %c0_i32 = arith.constant 0 : i32
    %c0_i32_0 = arith.constant 0 : i32
    %c0_i32_1 = arith.constant 0 : i32
    %c0_i32_2 = arith.constant 0 : i32
    return %c0_i32, %c0_i32_0, %c0_i32_1 : i32, i32, i32
  }
  func.func @transform_20(%arg0: i32) -> (i32, i32) {
    %c0_i32 = arith.constant 0 : i32
    %c0_i32_0 = arith.constant 0 : i32
    %c0_i32_1 = arith.constant 0 : i32
    return %c0_i32, %c0_i32_0 : i32, i32
  }
  func.func @transform_21(%arg0: i32) -> (i32, i32) {
    %c0_i32 = arith.constant 0 : i32
    %c0_i32_0 = arith.constant 0 : i32
    %c0_i32_1 = arith.constant 0 : i32
    return %c0_i32, %c0_i32_0 : i32, i32
  }
  func.func @transform_22(%arg0: i32) -> (i32, i32, i32) {
    %c0_i32 = arith.constant 0 : i32
    %c0_i32_0 = arith.constant 0 : i32
    %c0_i32_1 = arith.constant 0 : i32
    return %arg0, %c0_i32, %c0_i32_0 : i32, i32, i32
  }
}

</mosaic_0001>

<bundles_post_ra>
// kernel: title_model_forward.1
= control target key start
LH: loop header
LB: loop body
LE: loop exit
PB: predicated region body
PF: predicated region fallthrough
CT: control target
= control target key end

     0   :  { %s4004_s0 = inlined_call_operand.vmem [shape: f32[2,8,32], index: 0, kind: input, shape index: {}]   ;;  %s4005_s1 = inlined_call_operand.vmem [shape: f32[2,1,8], index: 1, kind: input, shape index: {}]   ;;  %s4006_s2 = inlined_call_operand.vmem [shape: f32[1,32], index: 2, kind: input, shape index: {}]   ;;  %s4007_s3 = inlined_call_operand.vmem [shape: f32[1,32], index: 3, kind: input, shape index: {}]   ;;  %s4008_s4 = inlined_call_operand.vmem [shape: bf16[2,32,32], index: 4, kind: input, shape index: {}]   ;;  %s4009_s5 = inlined_call_operand.vmem [shape: f32[2,1,32], index: 5, kind: input, shape index: {}]   ;;  %s4010_s6 = inlined_call_operand.vmem [shape: bf16[2,32,32], index: 6, kind: input, shape index: {}]   ;;  %s4011_s7 = inlined_call_operand.vmem [shape: f32[2,1,32], index: 7, kind: input, shape index: {}]   ;;  %s4012_s8 = inlined_call_operand.vmem [shape: bf16[2,32,32], index: 8, kind: input, shape index: {}]   ;;  %s4013_s9 = inlined_call_operand.vmem [shape: f32[2,1,32], index: 9, kind: input, shape index: {}]   ;;  %s4014_s10 = inlined_call_operand.vmem [shape: bf16[2,32,32], index: 10, kind: input, shape index: {}]   ;;  %s4015_s11 = inlined_call_operand.vmem [shape: f32[2,1,32], index: 11, kind: input, shape index: {}]   ;;  %s4016_s12 = inlined_call_operand.vmem [shape: f32[2,1,32], index: 12, kind: input, shape index: {}]   ;;  %s4017_s13 = inlined_call_operand.vmem [shape: f32[2,1,32], index: 13, kind: input, shape index: {}]   ;;  %s4018_s14 = inlined_call_operand.vmem [shape: bf16[2,32,64], index: 14, kind: input, shape index: {}]   ;;  %s4019_s15 = inlined_call_operand.vmem [shape: f32[2,1,64], index: 15, kind: input, shape index: {}]   ;;  %s4020_s16 = inlined_call_operand.vmem [shape: bf16[2,64,32], index: 16, kind: input, shape index: {}]   ;;  %s4021_s17 = inlined_call_operand.vmem [shape: f32[2,1,32], index: 17, kind: input, shape index: {}]   ;;  %s4022_s18 = inlined_call_operand.vmem [shape: f32[2,1,32], index: 18, kind: input, shape index: {}]   ;;  %s4023_s19 = inlined_call_operand.vmem [shape: f32[2,1,32], index: 19, kind: input, shape index: {}]   ;;  %s4024_s20 = inlined_call_operand.vmem [shape: bf16[32,128], index: 20, kind: input, shape index: {}]   ;;  %s4025_s21 = inlined_call_operand.vmem [shape: f32[1,128], index: 21, kind: input, shape index: {}]   ;;  %s4026_s22 = inlined_call_operand.hbm [shape: f32[2,1,128], index: 22, kind: output, shape index: {}]  }
   0x1   :  { %4042 = sst [smem:[#allocation11_spill]] %s4004_s0 }
   0x2   :  { %4043 = sst [smem:[#allocation12_spill]] %s4005_s1 }
   0x3   :  { %4044 = sst [smem:[#allocation13_spill]] %s4006_s2 }
   0x4   :  { %4045 = sst [smem:[#allocation14_spill]] %s4007_s3 }
   0x5   :  { %4046 = sst [smem:[#allocation15_spill]] %s4008_s4 }
   0x6   :  { %4047 = sst [smem:[#allocation16_spill]] %s4009_s5 }
   0x7   :  { %4048 = sst [smem:[#allocation17_spill]] %s4010_s6 }
   0x8   :  { %4049 = sst [smem:[#allocation18_spill]] %s4011_s7 }
   0x9   :  { %4050 = sst [smem:[#allocation19_spill]] %s4026_s22 }
   0xa   :  { %27 = vsyncpa [#allocation3], 0 }
   0xb   :  { %29 = vsyncpa [#allocation3 + $0x1], 0  ;;  %s3501_s3 = smov 0   ;;  %s3503_s28 = smov 0  }
   0xc   :  { %s3505_s29 = smov 0   ;;  %s3507_s30 = smov 0  }
   0xd LB: > { %4051 = sst [smem:[#allocation5_spill]] %s3363_s3  ;;  %s3522_s4 = sadd.s32 4294967295, %s3375_s30   ;;  %s3375_s30 = sphi %s3507_s30, %s4076_s30   ;;  %s3371_s29 = sphi %s3505_s29, %s4078_s29   ;;  %s3367_s28 = sphi %s3503_s28, %s4080_s28   ;;  %s3363_s3 = sphi %s3501_s3, %s4079_s3  }
   0xe   : > { %4052 = sst [smem:[#allocation6_spill]] %s3371_s29  ;;  %s2779_s0 = sadd.s32 4294967294, %s3375_s30  }
   0xf   : > { %4053 = sst [smem:[#allocation7_spill]] %s3375_s30  ;;  %s3526_s23 = sadd.s32 1, %s3375_s30  }
  0x10   : > { %4054 = sst [smem:[#allocation8_spill]] %s3526_s23  ;;  %s514_s1 = sadd.s32 1, %s3371_s29 }
  0x11   : > { %s511_s5 = ssub.s32 %s3375_s30, %s3526_s23  ;;  %p524_p0 = scmp.ne.s32.totalorder %s3371_s29, %s3367_s28 }
  0x12   : > { %p512_p1 = scmp.eq.s32.totalorder %s511_s5, 0  ;;  %p525_p2 = scmp.eq.s32.totalorder %s3522_s4, 1 }
  0x13   : > { %p530_p3 = scmp.ne.s32.totalorder %s3367_s28, %s3363_s3  ;;  %p531_p4 = scmp.eq.s32.totalorder %s2779_s0, 1 }
  0x14   : > { %s3537_s24 = scalar_select %p512_p1, %s3371_s29, %s514_s1  }
  0x15   : > { %p3539_p5 = por %p525_p2, %p524_p0  ;;  %p3543_p6 = por %p531_p4, %p530_p3 }
  0x16   : > { %4055 = sst [smem:[#allocation9_spill]] %s3537_s24  ;;  %p2782_p7 = scmp.ge.s32.totalorder %s3375_s30, 1 }
  0x17   : > { %s4057_s25 = scalar_select %p3543_p6, 1, 0 }
  0x18   : > { %p622_p8 = scmp.lt.s32.totalorder %s3375_s30, 3 }
  0x19   : > { %4058 = sst [smem:[#allocation10_spill]] %s4057_s25 }
  0x1a   : > { %p623_p9 = pnand %p2782_p7, %p622_p8 }
  0x1b   : > { %p685_p10 = scmp.lt.s32.totalorder (!%p623_p9), %s3522_s4, 1  ;;  %vm699_vm0 = vcmask (!%p623_p9), 261120   ;;  %s4059_s1 = sld [smem:[#allocation11_spill]] (!%p623_p9)  ;;  %v3377_v9 = vmov (!%p623_p9), 0.0   ;;  %vm3378_vm1 = vmmov (!%p623_p9), 0   ;;  %v3241_v21 = vld [vmem:[%s4012_s8] sm:$0xff] (!%p623_p9)   ;;  %v973_v56 = vlaneseq (!%p623_p9) }
  0x1c   : > { %626 = sbr.rel (%p623_p9) target bundleno = 5711 (0x164f), region = 108  ;;  %s4060_s23 = sld [smem:[#allocation15_spill]] (!%p623_p9)  ;;  %2982 = vmatprep.subr.bf16.mxu0 (!%p623_p9), %v3377_v9  ;;  %2990 = vmatprep.subr.bf16.mxu1 (!%p623_p9), %v3377_v9  ;;  %v3242_v23 = vld [vmem:[%s4012_s8 + $0x8] sm:$0xff] (!%p623_p9)   ;;  %vm924_vm2 = vcmask (!%p623_p9), 64512   ;;  %v2795_v38 = vld [vmem:[%s4013_s9] ss:$0 sm:$0xff] (!%p623_p9) }
  0x1d   : > { %s4061_s30 = sld [smem:[#allocation17_spill]] (!%p623_p9)  ;;  %2986 = vmatprep.mubr.msk.bf16.mxu0 (!%p623_p9), %vm3378_vm1, %v3377_v9  ;;  %2994 = vmatprep.mubr.msk.bf16.mxu1 (!%p623_p9), %vm3378_vm1, %v3377_v9  ;;  %s4065_s7 = sld [smem:[#allocation18_spill]] (!%p623_p9)  ;;  %vm994_vm3 = vcmask (!%p623_p9), 1043456   ;;  %v974_v59 = vshrl.u32 (!%p623_p9), %v973_v56, 7  ;;  %vm1390_vm4 = vcmask (!%p623_p9), 130048   ;;  %vm1392_vm5 = vcmask (!%p623_p9), 195584  }
  0x1e   : > { %s4066_s25 = sld [smem:[#allocation16_spill]] (!%p623_p9)  ;;  %s4039_s0 = smov (!%p623_p9), 8   ;;  %vm1607_vm6 = vcmask (!%p623_p9), 523264  }
  0x1f   : > { %v975_v61 = vsub.s32 (!%p623_p9), 0, %v974_v59  ;;  %s4038_s3 = smov (!%p623_p9), 16   ;;  %s4070_s29 = smov (!%p623_p9), 16  }
  0x20   : > { %s4071_s27 = smov (!%p623_p9), 24  }
  0x22   : > { %v3237_v7 = vld [vmem:[%s4060_s23] sm:$0xff] (!%p623_p9)   ;;  %v3239_v10 = vld [vmem:[%s4060_s23 + $0x8] sm:$0xff] (!%p623_p9)  }
  0x23   : > { %s3551_s26 = scalar_select %p685_p10, %s3522_s4, 1  ;;  %v3238_v8 = vld [vmem:[%s4061_s30] sm:$0xff]   ;;  %2983 = vmatpush3.bf16.msra.mxu0 %v3237_v7 }
  0x24   : > { %s4062_s22 = smov %s4061_s30  ;;  %2991 = vmatpush3.bf16.msra.mxu1 %v3238_v8  ;;  %2984 = vmatprep.subr.bf16.mxu0 %v3377_v9  ;;  %s4063_s30 = sld [smem:[#allocation13_spill]]  ;;  %v2791_v24 = vld [vmem:[%s4065_s7] ss:$0 sm:$0xff] }
  0x25   : > { %s2783_s2 = sshll.u32 %s3551_s26, 3  ;;  %v3240_v11 = vld [vmem:[%s4062_s22 + $0x8] sm:$0xff]   ;;  %2992 = vmatprep.subr.bf16.mxu1 %v3377_v9  ;;  %v2787_v25 = vld [vmem:[%s4066_s25] ss:$0 sm:$0xff] }
  0x26   : > { %s688_s5 = scalar_lea.vmem %s4059_s1, %s2783_s2  ;;  %s3380_s2 = smov 120  }
  0x27   : > { %v696_v0 = vld [vmem:[%s688_s5] sm:$0xff]  ;;  %2985 = vmatpush3.bf16.msra.mxu0 %v3239_v10  ;;  %s4064_s5 = sld [smem:[#allocation14_spill]]  ;;  %s4040_s1 = smov 104  }
  0x28   : > { %v700_v1 = vsel %vm699_vm0, %v696_v0, 0.0  ;;  %2993 = vmatpush3.bf16.msra.mxu1 %v3240_v11  ;;  %2998 = vmatprep.subr.bf16.mxu0 %v3377_v9 }
  0x29   : > { %701 = vadd.xlane.f32.xlu0 %v700_v1  ;;  %3006 = vmatprep.subr.bf16.mxu1 %v3377_v9 }
  0x2a   : > { %v2785_v16 = vld [vmem:[%s4063_s30] ss:$0 sm:$0xff]  ;;  %s4067_s30 = sld [smem:[#allocation12_spill]] }
  0x2d   : > { %v2786_v18 = vld [vmem:[%s4064_s5] ss:$0 sm:$0xff]  ;;  %s3379_s5 = smov 112  }
  0x30   : > { %s691_s24 = scalar_lea.vmem %s4067_s30, %s3551_s26  ;;  %s4072_s26 = sld [smem:[#allocation19_spill]] }
  0x31   : > { %v693_v57 = vld [vmem:[%s691_s24] sm:$0x1]  ;;  %s4037_s24 = smov 24  }
  0x32   : > { %v2784_v58 = vadd.f32 -1.0, %v693_v57 }
  0x34   : > { %v695_v60 = vmul.f32 1e+09, %v2784_v58 }
  0x36   : > { %v3652_v62 = vrot.slane %v695_v60, %v975_v61 }
  0xb6   : > { %v702_v2 = vpop.xlane.xlu0 %701 }
  0xb7   : > { %v704_v3 = vmul.f32 0.03125, %v702_v2 }
  0xb9   : > { %v705_v4 = vsub.f32 %v696_v0, %v704_v3 }
  0xbb   : > { %v706_v5 = vmul.f32 %v705_v4, %v705_v4 }
  0xbd   : > { %v707_v6 = vsel %vm699_vm0, %v706_v5, 0.0 }
  0xbe   : > { %708 = vadd.xlane.f32.xlu0 %v707_v6 }
 0x14b   : > { %v709_v12 = vpop.xlane.xlu0 %708 }
 0x14c   : > { %v710_v13 = vmul.f32 0.03125, %v709_v12 }
 0x14e   : > { %v711_v14 = vadd.f32 1e-05, %v710_v13 }
 0x150   : > { %3267 = vrsqrt.f32 %v711_v14 }
 0x15a   : > { %v3268_v15 = vpop.eup %3267 }
 0x15b   : > { %v713_v17 = vmul.f32 %v3268_v15, %v705_v4 }
 0x15d   : > { %v720_v19 = vmul.f32 %v2785_v16, %v713_v17 }
 0x15f   : > { %v3587_v20 = vadd.f32 %v2786_v18, %v720_v19 }
 0x161   : > { %v728_v22 = vpack.c.bf16 %v3587_v20, %v3587_v20 }
 0x163   : > { %2987 = vmatmul.mubr.msk.bf16.vlgmr.msra.gmra.mrb[0].mxu0 %vm699_vm0, %v728_v22  ;;  %2995 = vmatmul.mubr.msk.bf16.vlgmr.msra.gmra.mrb[0].mxu1 %vm699_vm0, %v728_v22 }
 0x164   : > { %2999 = vmatpush3.bf16.msra.mxu0 %v3241_v21  ;;  %3002 = vmatprep.mubr.msk.bf16.mxu0 %vm3378_vm1, %v3377_v9 }
 0x165   : > { %3000 = vmatprep.subr.bf16.mxu0 %v3377_v9  ;;  %3008 = vmatprep.mubr.msk.bf16.mxu1 %vm3378_vm1, %v3377_v9 }
 0x168   : > { %3001 = vmatpush3.bf16.msra.mxu0 %v3242_v23 }
 0x169   : > { %3012 = vmatprep.subr.bf16.mxu0 %v3377_v9 }
 0x16b   : > { %3003 = vmatmul.mubr.msk.bf16.vlgmr.msra.gmra.mrb[4].mxu0 %vm699_vm0, %v728_v22 }
 0x16c   : > { %3014 = vmatprep.mubr.msk.bf16.mxu0 %vm3378_vm1, %v3377_v9 }
 0x236   : > { %v789_v26 = vpop.f32.mrb[0].mxu0  ;;  %v852_v27 = vpop.f32.mrb[0].mxu1 }
 0x237   : > { %v853_v28 = vadd.f32 %v2791_v24, %v852_v27  ;;  %v2988_v29 = vpop.f32.mrb[1].mxu0  ;;  %v2996_v30 = vpop.f32.mrb[1].mxu1  ;;  %v790_v33 = vadd.f32 %v2787_v25, %v789_v26 }
 0x238   : > { %v792_v31 = vpop.f32.mrb[2].mxu0  ;;  %v855_v32 = vpop.f32.mrb[2].mxu1 }
 0x239   : > { %v922_v34 = vpack.c.bf16 %v853_v28, %v853_v28  ;;  %v2989_v35 = vpop.f32.mrb[3].mxu0  ;;  %v2997_v36 = vpop.f32.mrb[3].mxu1  ;;  %v921_v39 = vpack.c.bf16 %v790_v33, %v790_v33 }
 0x23b   : > { %1155 = vrot.lane.b32.xlu0 %v922_v34, %s3379_s5  ;;  %1042 = vrot.lane.b32.xlu1 %v922_v34, %s3380_s2  ;;  %v929_v37 = vsel %vm924_vm2, %v922_v34, 0 }
 0x23c   : > { %3007 = vmatpush3.bf16.xpose.msra.mxu1 %v929_v37 }
 0x23d   : > { %3018 = vmatprep.subr.bf16.mxu1 %v3377_v9 }
 0x23e   : > { %v915_v40 = vpop.f32.mrb[4].mxu0 }
 0x23f   : > { %v916_v41 = vadd.f32 %v2795_v38, %v915_v40  ;;  %1039 = vrot.lane.b32.xlu1 %v921_v39, %s3380_s2  ;;  %v3004_v42 = vpop.f32.mrb[5].mxu0 }
 0x240   : > { %v918_v43 = vpop.f32.mrb[6].mxu0 }
 0x241   : > { %v3622_v44 = vpack.c.bf16 %v916_v41, %v916_v41  ;;  %v3005_v45 = vpop.f32.mrb[7].mxu0 }
 0x243   : > { %1153 = vrot.lane.b32.xlu1 %v921_v39, %s3379_s5  ;;  %3009 = vmatmul.mubr.msk.bf16.vlgmr.msra.gmra.mrb[4].mxu1 %vm924_vm2, %v921_v39  ;;  %v996_v46 = vsel %vm994_vm3, %v3622_v44, 0 }
 0x244   : > { %3013 = vmatpush3.bf16.msra.mxu0 %v996_v46  ;;  %3020 = vmatprep.mubr.msk.bf16.mxu1 %vm3378_vm1, %v3377_v9 }
 0x245   : > { %3024 = vmatprep.subr.bf16.mxu0 %v3377_v9 }
 0x247   : > { %1267 = vrot.lane.b32.xlu1 %v922_v34, %s4040_s1 }
 0x24b   : > { %1265 = vrot.lane.b32.xlu1 %v921_v39, %s4040_s1 }
 0x2ad   : > { %v1043_v47 = vpop.permute.xlu1 %1042  ;;  %v1156_v50 = vpop.permute.xlu0 %1155 }
 0x2ae   : > { %v1048_v48 = vsel %vm924_vm2, %v1043_v47, 0  ;;  %v1161_v52 = vsel %vm924_vm2, %v1156_v50, 0 }
 0x2af   : > { %3019 = vmatpush3.bf16.xpose.msra.mxu1 %v1048_v48 }
 0x2b0   : > { %3030 = vmatprep.subr.bf16.mxu1 %v3377_v9 }
 0x2b1   : > { %v1040_v49 = vpop.permute.xlu1 %1039 }
 0x2b5   : > { %v1154_v51 = vpop.permute.xlu1 %1153 }
 0x2b6   : > { %3021 = vmatmul.mubr.msk.bf16.vlgmr.msra.gmra.mrb[8].mxu1 %vm924_vm2, %v1040_v49 }
 0x2b7   : > { %3031 = vmatpush3.bf16.xpose.msra.mxu1 %v1161_v52  ;;  %3032 = vmatprep.mubr.msk.bf16.mxu1 %vm3378_vm1, %v3377_v9 }
 0x2b8   : > { %3042 = vmatprep.subr.bf16.mxu1 %v3377_v9 }
 0x2b9   : > { %v1268_v53 = vpop.permute.xlu1 %1267 }
 0x2ba   : > { %v1273_v54 = vsel %vm924_vm2, %v1268_v53, 0 }
 0x2bd   : > { %v1266_v55 = vpop.permute.xlu1 %1265 }
 0x2be   : > { %3033 = vmatmul.mubr.msk.bf16.vlgmr.msra.gmra.mrb[12].mxu1 %vm924_vm2, %v1154_v51 }
 0x2bf   : > { %3043 = vmatpush3.bf16.xpose.msra.mxu1 %v1273_v54  ;;  %3044 = vmatprep.mubr.msk.bf16.mxu1 %vm3378_vm1, %v3377_v9 }
 0x2c0   : > { %3054 = vmatprep.subr.bf16.mxu1 %v3377_v9 }
 0x2c6   : > { %3045 = vmatmul.mubr.msk.bf16.vlgmr.msra.gmra.mrb[16].mxu1 %vm924_vm2, %v1266_v55 }
 0x2c7   : > { %3058 = vmatprep.mubr.msk.bf16.mxu1 %vm3378_vm1, %v3377_v9 }
 0x316   : > { %v965_v63 = vpop.f32.mrb[4].mxu1 }
 0x317   : > { %v971_v0 = vmul.f32 0.35355338, %v965_v63  ;;  %v3010_v1 = vpop.f32.mrb[5].mxu1 }
 0x318   : > { %v968_v2 = vpop.f32.mrb[6].mxu1 }
 0x319   : > { %v3011_v3 = vpop.f32.mrb[7].mxu1  ;;  %v978_v4 = vadd.f32 %v3652_v62, %v971_v0 }
 0x31b   : > { %v979_v5 = vsel %vm924_vm2, %v978_v4, -inf }
 0x31c   : > { %980 = vmax.xlane.f32.xlu1 %v979_v5 }
 0x389   : > { %v1084_v6 = vpop.f32.mrb[8].mxu1 }
 0x38a   : > { %v1090_v7 = vmul.f32 0.35355338, %v1084_v6  ;;  %v3022_v8 = vpop.f32.mrb[9].mxu1 }
 0x38b   : > { %v1087_v10 = vpop.f32.mrb[10].mxu1 }
 0x38c   : > { %v3023_v11 = vpop.f32.mrb[11].mxu1  ;;  %v1091_v12 = vadd.f32 %v1090_v7, %v3652_v62 }
 0x38e   : > { %v1092_v13 = vsel %vm924_vm2, %v1091_v12, -inf }
 0x38f   : > { %1093 = vmax.xlane.f32.xlu0 %v1092_v13  ;;  %v3243_v13 = vld [vmem:[%s4014_s10] sm:$0xff]  }
 0x390   : > { %3055 = vmatpush3.bf16.msra.mxu1 %v3243_v13 }
 0x391   : > { %v1197_v14 = vpop.f32.mrb[12].mxu1  ;;  %3056 = vmatprep.subr.bf16.mxu1 %v3377_v9 }
 0x392   : > { %v1203_v15 = vmul.f32 0.35355338, %v1197_v14  ;;  %v3034_v16 = vpop.f32.mrb[13].mxu1 }
 0x393   : > { %v1200_v17 = vpop.f32.mrb[14].mxu1 }
 0x394   : > { %v3035_v18 = vpop.f32.mrb[15].mxu1  ;;  %v1204_v19 = vadd.f32 %v1203_v15, %v3652_v62 }
 0x396   : > { %v1205_v21 = vsel %vm924_vm2, %v1204_v19, -inf }
 0x397   : > { %1206 = vmax.xlane.f32.xlu1 %v1205_v21 }
 0x399   : > { %v1309_v22 = vpop.f32.mrb[16].mxu1 }
 0x39a   : > { %v1315_v23 = vmul.f32 0.35355338, %v1309_v22  ;;  %v3046_v24 = vpop.f32.mrb[17].mxu1 }
 0x39b   : > { %v1312_v25 = vpop.f32.mrb[18].mxu1 }
 0x39c   : > { %v3047_v26 = vpop.f32.mrb[19].mxu1  ;;  %v1316_v27 = vadd.f32 %v1315_v23, %v3652_v62  ;;  %v3244_v23 = vld [vmem:[%s4014_s10 + $0x8] sm:$0xff]  }
 0x39d   : > { %3057 = vmatpush3.bf16.msra.mxu1 %v3244_v23 }
 0x39e   : > { %v1317_v28 = vsel %vm924_vm2, %v1316_v27, -inf  ;;  %3070 = vmatprep.subr.bf16.mxu1 %v3377_v9 }
 0x39f   : > { %1318 = vmax.xlane.f32.xlu1 %v1317_v28 }
 0x3a9   : > { %v981_v29 = vpop.xlane.xlu1 %980 }
 0x3aa   : > { %v982_v30 = vsub.f32 %v978_v4, %v981_v29 }
 0x3ac   : > { %v983_v31 = vmul.f32 1.442695, %v982_v30 }
 0x3ae   : > { %3269 = vpow2.f32 %v983_v31 }
 0x3b8   : > { %v3270_v32 = vpop.eup %3269 }
 0x3b9   : > { %v985_v33 = vsel %vm924_vm2, %v3270_v32, 0.0 }
 0x3ba   : > { %986 = vadd.xlane.f32.xlu0 %v985_v33 }
 0x41c   : > { %v1094_v34 = vpop.xlane.xlu0 %1093 }
 0x41d   : > { %v1095_v35 = vsub.f32 %v1091_v12, %v1094_v34 }
 0x41f   : > { %v1096_v36 = vmul.f32 1.442695, %v1095_v35  ;;  %v2807_v35 = vld [vmem:[%s4015_s11] ss:$0 sm:$0xff] }
 0x421   : > { %3271 = vpow2.f32 %v1096_v36 }
 0x424   : > { %v1207_v37 = vpop.xlane.xlu1 %1206 }
 0x425   : > { %v1208_v38 = vsub.f32 %v1204_v19, %v1207_v37 }
 0x427   : > { %v1209_v39 = vmul.f32 1.442695, %v1208_v38 }
 0x429   : > { %3273 = vpow2.f32 %v1209_v39 }
 0x42b   : > { %v3272_v40 = vpop.eup %3271 }
 0x42c   : > { %v1098_v41 = vsel %vm924_vm2, %v3272_v40, 0.0  ;;  %v1319_v46 = vpop.xlane.xlu1 %1318 }
 0x42d   : > { %1099 = vadd.xlane.f32.xlu1 %v1098_v41  ;;  %v1320_v47 = vsub.f32 %v1316_v27, %v1319_v46 }
 0x42f   : > { %v1321_v48 = vmul.f32 1.442695, %v1320_v47 }
 0x433   : > { %v3274_v42 = vpop.eup %3273 }
 0x434   : > { %v1211_v43 = vsel %vm924_vm2, %v3274_v42, 0.0 }
 0x435   : > { %1212 = vadd.xlane.f32.xlu0 %v1211_v43 }
 0x43e   : > { %1217 = vrot.lane.b32.xlu1 %v3622_v44, %s3379_s5 }
 0x447   : > { %v987_v45 = vpop.xlane.xlu0 %986 }
 0x448   : > { %3275 = vrcp.f32 %v987_v45 }
 0x449   : > { %3277 = vpow2.f32 %v1321_v48 }
 0x44b   : > { %1105 = vrot.lane.b32.xlu0 %v3622_v44, %s3380_s2 }
 0x452   : > { %v3276_v49 = vpop.eup %3275 }
 0x453   : > { %v989_v50 = vmul.f32 %v3276_v49, %v3270_v32  ;;  %v3278_v52 = vpop.eup %3277  ;;  %v3245_v49 = vld [vmem:[%s4018_s14] sm:$0xff]  }
 0x454   : > { %v1323_v53 = vsel %vm924_vm2, %v3278_v52, 0.0 }
 0x455   : > { %v990_v51 = vpack.c.bf16 %v989_v50, %v989_v50 }
 0x457   : > { %3015 = vmatmul.mubr.msk.bf16.vlgmr.msra.gmra.mrb[8].mxu0 %vm924_vm2, %v990_v51 }
 0x458   : > { %3026 = vmatprep.mubr.msk.bf16.mxu0 %vm3378_vm1, %v3377_v9 }
 0x462   : > { %1324 = vadd.xlane.f32.xlu1 %v1323_v53 }
 0x473   : > { %1329 = vrot.lane.b32.xlu1 %v3622_v44, %s4040_s1  ;;  %s683_s1 = sand.u32 1, %s3367_s28  }
 0x4ba   : > { %v1100_v54 = vpop.xlane.xlu1 %1099 }
 0x4bb   : > { %3279 = vrcp.f32 %v1100_v54  ;;  %v2811_v54 = vld [vmem:[%s4016_s12] ss:$0 sm:$0xff] }
 0x4be   : > { %v1218_v60 = vpop.permute.xlu1 %1217 }
 0x4bf   : > { %v1223_v63 = vsel %vm994_vm3, %v1218_v60, 0  ;;  %v3247_v60 = vld [vmem:[%s4020_s16] sm:$0xff]  }
 0x4c2   : > { %v1213_v55 = vpop.xlane.xlu0 %1212 }
 0x4c3   : > { %3281 = vrcp.f32 %v1213_v55 }
 0x4c5   : > { %v3280_v56 = vpop.eup %3279 }
 0x4c6   : > { %v1102_v57 = vmul.f32 %v3280_v56, %v3272_v40  ;;  %v1106_v58 = vpop.permute.xlu0 %1105  ;;  %v2812_v56 = vld [vmem:[%s4017_s13] ss:$0 sm:$0xff] }
 0x4c7   : > { %v1111_v59 = vsel %vm994_vm3, %v1106_v58, 0 }
 0x4c8   : > { %3025 = vmatpush3.bf16.msra.mxu0 %v1111_v59  ;;  %v1103_v61 = vpack.c.bf16 %v1102_v57, %v1102_v57 }
 0x4c9   : > { %3036 = vmatprep.subr.bf16.mxu0 %v3377_v9 }
 0x4cb   : > { %3027 = vmatmul.mubr.msk.bf16.vlgmr.msra.gmra.mrb[12].mxu0 %vm924_vm2, %v1103_v61  ;;  %v3248_v61 = vld [vmem:[%s4020_s16 + $0x8] sm:$0xff]  }
 0x4cc   : > { %3037 = vmatpush3.bf16.msra.mxu0 %v1223_v63  ;;  %3038 = vmatprep.mubr.msk.bf16.mxu0 %vm3378_vm1, %v3377_v9  ;;  %v3249_v63 = vld [vmem:[%s4020_s16 + $0x10] sm:$0xff]  }
 0x4cd   : > { %v3282_v44 = vpop.eup %3281  ;;  %3048 = vmatprep.subr.bf16.mxu0 %v3377_v9 }
 0x4ce   : > { %v1215_v0 = vmul.f32 %v3282_v44, %v3274_v42  ;;  %v3250_v44 = vld [vmem:[%s4020_s16 + $0x18] sm:$0xff]  }
 0x4d0   : > { %v1216_v1 = vpack.c.bf16 %v1215_v0, %v1215_v0  ;;  %v2813_v0 = vld [vmem:[%s4019_s15] ss:$0 sm:$0xff] }
 0x4d3   : > { %3039 = vmatmul.mubr.msk.bf16.vlgmr.msra.gmra.mrb[16].mxu0 %vm924_vm2, %v1216_v1 }
 0x4d4   : > { %3050 = vmatprep.mubr.msk.bf16.mxu0 %vm3378_vm1, %v3377_v9 }
 0x4ef   : > { %v1325_v2 = vpop.xlane.xlu1 %1324 }
 0x4f0   : > { %3283 = vrcp.f32 %v1325_v2 }
 0x4f3   : > { %v1330_v3 = vpop.permute.xlu1 %1329 }
 0x4f4   : > { %v1335_v4 = vsel %vm994_vm3, %v1330_v3, 0 }
 0x4f5   : > { %3049 = vmatpush3.bf16.msra.mxu0 %v1335_v4 }
 0x4f6   : > { %3062 = vmatprep.subr.bf16.mxu0 %v3377_v9 }
 0x4fa   : > { %v3284_v5 = vpop.eup %3283 }
 0x4fb   : > { %v1327_v6 = vmul.f32 %v3284_v5, %v3278_v52 }
 0x4fd   : > { %v1328_v7 = vpack.c.bf16 %v1327_v6, %v1327_v6 }
 0x4ff   : > { %3051 = vmatmul.mubr.msk.bf16.vlgmr.msra.gmra.mrb[20].mxu0 %vm924_vm2, %v1328_v7 }
 0x500   : > { %3066 = vmatprep.mubr.msk.bf16.mxu0 %vm3378_vm1, %v3377_v9  ;;  %3063 = vmatpush3.bf16.msra.mxu0 %v3245_v49  ;;  %v2848_v49 = vld [vmem:[%s4013_s9 + $0x1] ss:$0 sm:$0xff] }
 0x501   : > { %3064 = vmatprep.subr.bf16.mxu0 %v3377_v9 }
 0x52a   : > { %v1032_v8 = vpop.f32.mrb[8].mxu0 }
 0x52b   : > { %v3016_v10 = vpop.f32.mrb[9].mxu0 }
 0x52c   : > { %v1035_v11 = vpop.f32.mrb[10].mxu0 }
 0x52d   : > { %v3017_v12 = vpop.f32.mrb[11].mxu0 }
 0x59e   : > { %v1147_v14 = vpop.f32.mrb[12].mxu0 }
 0x59f   : > { %1378 = vrot.lane.b32.xlu0 %v1147_v14, %s4039_s0  ;;  %v3028_v15 = vpop.f32.mrb[13].mxu0  ;;  %s4068_s0 = smov 104  }
 0x5a0   : > { %v1150_v16 = vpop.f32.mrb[14].mxu0 }
 0x5a1   : > { %v3029_v17 = vpop.f32.mrb[15].mxu0 }
 0x5a2   : > { %v2817_v17 = vld [vmem:[%s4021_s17] ss:$0 sm:$0xff] }
 0x5a6   : > { %v1259_v18 = vpop.f32.mrb[16].mxu0 }
 0x5a7   : > { %1382 = vrot.lane.b32.xlu1 %v1259_v18, %s4038_s3  ;;  %v3040_v19 = vpop.f32.mrb[17].mxu0  ;;  %s2703_s3 = scalar_lea.sflag [#allocation3], %s683_s1 }
 0x5a8   : > { %v1262_v21 = vpop.f32.mrb[18].mxu0 }
 0x5a9   : > { %v3041_v22 = vpop.f32.mrb[19].mxu0 }
 0x5d2   : > { %v1371_v24 = vpop.f32.mrb[20].mxu0 }
 0x5d3   : > { %1386 = vrot.lane.b32.xlu0 %v1371_v24, %s4037_s24  ;;  %v3052_v25 = vpop.f32.mrb[21].mxu0  ;;  %s4069_s24 = smov 8  }
 0x5d4   : > { %v1374_v26 = vpop.f32.mrb[22].mxu0 }
 0x5d5   : > { %v3053_v27 = vpop.f32.mrb[23].mxu0 }
 0x611   : > { %v1379_v28 = vpop.permute.xlu0 %1378 }
 0x612   : > { %v1389_v30 = vsel %vm924_vm2, %v1032_v8, %v1379_v28 }
 0x619   : > { %v1383_v29 = vpop.permute.xlu1 %1382 }
 0x61a   : > { %v1391_v31 = vsel %vm1390_vm4, %v1389_v30, %v1383_v29 }
 0x645   : > { %v1387_v32 = vpop.permute.xlu0 %1386 }
 0x646   : > { %v1393_v33 = vsel %vm1392_vm5, %v1391_v31, %v1387_v32  ;;  %v3251_v31 = vld [vmem:[%s4060_s23 + $0x10] sm:$0xff]  }
 0x647   : > { %v1394_v34 = vpack.c.bf16 %v1393_v33, %v1393_v33  ;;  %v3252_v32 = vld [vmem:[%s4012_s8 + $0x10] sm:$0xff]   ;;  %v3253_v33 = vld [vmem:[%s4060_s23 + $0x18] sm:$0xff]  }
 0x649   : > { %3059 = vmatmul.mubr.msk.bf16.vlgmr.msra.gmra.mrb[20].mxu1 %vm699_vm0, %v1394_v34  ;;  %v3254_v34 = vld [vmem:[%s4012_s8 + $0x18] sm:$0xff]  }
 0x64a   : > { %3078 = vmatprep.mubr.msk.bf16.mxu1 %vm3378_vm1, %v3377_v9  ;;  %3071 = vmatpush3.bf16.msra.mxu1 %v3247_v60 }
 0x64b   : > { %3072 = vmatprep.subr.bf16.mxu1 %v3377_v9 }
 0x64e   : > { %3073 = vmatpush3.bf16.msra.mxu1 %v3248_v61 }
 0x64f   : > { %3074 = vmatprep.subr.bf16.mxu1 %v3377_v9 }
 0x652   : > { %3075 = vmatpush3.bf16.msra.mxu1 %v3249_v63  ;;  %v2839_v63 = vld [vmem:[%s4065_s7 + $0x1] ss:$0 sm:$0xff] }
 0x653   : > { %3076 = vmatprep.subr.bf16.mxu1 %v3377_v9 }
 0x656   : > { %3077 = vmatpush3.bf16.msra.mxu1 %v3250_v44 }
 0x657   : > { %3098 = vmatprep.subr.bf16.mxu1 %v3377_v9 }
 0x71c   : > { %v1455_v36 = vpop.f32.mrb[20].mxu1 }
 0x71d   : > { %v1456_v37 = vadd.f32 %v2807_v35, %v1455_v36  ;;  %v3060_v38 = vpop.f32.mrb[21].mxu1 }
 0x71e   : > { %v1458_v39 = vpop.f32.mrb[22].mxu1 }
 0x71f   : > { %v3061_v40 = vpop.f32.mrb[23].mxu1  ;;  %v1461_v41 = vadd.f32 %v1456_v37, %v3587_v20  ;;  %v3246_v20 = vld [vmem:[%s4018_s14 + $0x8] sm:$0xff]   ;;  %v2823_v39 = vld [vmem:[%s4022_s18] ss:$0 sm:$0xff] }
 0x720   : > { %3065 = vmatpush3.bf16.msra.mxu0 %v3246_v20 }
 0x721   : > { %v1464_v42 = vsel %vm699_vm0, %v1461_v41, 0.0  ;;  %3082 = vmatprep.subr.bf16.mxu0 %v3377_v9 }
 0x722   : > { %1465 = vadd.xlane.f32.xlu1 %v1464_v42 }
 0x7af   : > { %v1466_v43 = vpop.xlane.xlu1 %1465 }
 0x7b0   : > { %v1467_v45 = vmul.f32 0.03125, %v1466_v43 }
 0x7b2   : > { %v1468_v46 = vsub.f32 %v1461_v41, %v1467_v45  ;;  %v2824_v41 = vld [vmem:[%s4023_s19] ss:$0 sm:$0xff]  ;;  %v3255_v45 = vld [vmem:[%s4062_s22 + $0x10] sm:$0xff]  }
 0x7b4   : > { %v1469_v47 = vmul.f32 %v1468_v46, %v1468_v46 }
 0x7b6   : > { %v1470_v48 = vsel %vm699_vm0, %v1469_v47, 0.0  ;;  %v3256_v47 = vld [vmem:[%s4062_s22 + $0x18] sm:$0xff]  }
 0x7b7   : > { %1471 = vadd.xlane.f32.xlu0 %v1470_v48  ;;  %v2830_v48 = vld [vmem:[%s4066_s25 + $0x1] ss:$0 sm:$0xff] }
 0x844   : > { %v1472_v50 = vpop.xlane.xlu0 %1471 }
 0x845   : > { %v1473_v51 = vmul.f32 0.03125, %v1472_v50 }
 0x847   : > { %v1474_v52 = vadd.f32 1e-05, %v1473_v51 }
 0x849   : > { %3285 = vrsqrt.f32 %v1474_v52 }
 0x853   : > { %v3286_v53 = vpop.eup %3285 }
 0x854   : > { %v1476_v55 = vmul.f32 %v3286_v53, %v1468_v46 }
 0x856   : > { %v1483_v57 = vmul.f32 %v2811_v54, %v1476_v55 }
 0x858   : > { %v1490_v58 = vadd.f32 %v2812_v56, %v1483_v57 }
 0x85a   : > { %v1491_v59 = vpack.c.bf16 %v1490_v58, %v1490_v58 }
 0x85c   : > { %3067 = vmatmul.mubr.msk.bf16.vlgmr.msra.gmra.mrb[24].mxu0 %vm699_vm0, %v1491_v59 }
 0x85d   : > { %3086 = vmatprep.mubr.msk.bf16.mxu0 %vm3378_vm1, %v3377_v9  ;;  %3083 = vmatpush3.bf16.msra.mxu0 %v3251_v31 }
 0x85e   : > { %3084 = vmatprep.subr.bf16.mxu0 %v3377_v9 }
 0x861   : > { %3085 = vmatpush3.bf16.msra.mxu0 %v3253_v33 }
 0x862   : > { %3090 = vmatprep.subr.bf16.mxu0 %v3377_v9 }
 0x92f   : > { %v1552_v1 = vpop.f32.mrb[24].mxu0 }
 0x930   : > { %v1553_v2 = vadd.f32 %v2813_v0, %v1552_v1  ;;  %v3068_v3 = vpop.f32.mrb[25].mxu0 }
 0x931   : > { %v1555_v4 = vpop.f32.mrb[26].mxu0 }
 0x932   : > { %v1558_v5 = vmul.f32 %v1553_v2, %v1553_v2  ;;  %v3069_v6 = vpop.f32.mrb[27].mxu0 }
 0x934   : > { %v1559_v7 = vmul.f32 %v1558_v5, %v1553_v2 }
 0x936   : > { %v1560_v8 = vmul.f32 0.044715, %v1559_v7 }
 0x938   : > { %v1561_v10 = vadd.f32 %v1560_v8, %v1553_v2 }
 0x93a   : > { %v1562_v11 = vmul.f32 0.7978846, %v1561_v10 }
 0x93c   : > { %3287 = vtanh.f32 %v1562_v11 }
 0x946   : > { %v3288_v12 = vpop.eup %3287 }
 0x947   : > { %v1564_v13 = vadd.f32 1.0, %v3288_v12 }
 0x949   : > { %v1565_v14 = vmul.f32 0.5, %v1564_v13 }
 0x94b   : > { %v1566_v15 = vmul.f32 %v1565_v14, %v1553_v2 }
 0x94d   : > { %v1567_v16 = vpack.c.bf16 %v1566_v15, %v1566_v15 }
 0x94f   : > { %3079 = vmatmul.mubr.msk.bf16.vlgmr.msra.gmra.mrb[24].mxu1 %vm1607_vm6, %v1567_v16 }
 0x950   : > { %3102 = vmatprep.mubr.msk.bf16.mxu1 %vm3378_vm1, %v3377_v9  ;;  %3099 = vmatpush3.bf16.msra.mxu1 %v3252_v32 }
 0x951   : > { %3100 = vmatprep.subr.bf16.mxu1 %v3377_v9 }
 0x954   : > { %3101 = vmatpush3.bf16.msra.mxu1 %v3254_v34 }
 0x955   : > { %3112 = vmatprep.subr.bf16.mxu1 %v3377_v9 }
 0xa22   : > { %v1645_v18 = vpop.f32.mrb[24].mxu1 }
 0xa23   : > { %v1646_v19 = vadd.f32 %v2817_v17, %v1645_v18  ;;  %v3080_v21 = vpop.f32.mrb[25].mxu1 }
 0xa24   : > { %v1648_v22 = vpop.f32.mrb[26].mxu1 }
 0xa25   : > { %v3081_v23 = vpop.f32.mrb[27].mxu1  ;;  %v1651_v24 = vadd.f32 %v1646_v19, %v1490_v58 }
 0xa27   : > { %v1654_v25 = vsel %vm699_vm0, %v1651_v24, 0.0 }
 0xa28   : > { %1655 = vadd.xlane.f32.xlu0 %v1654_v25 }
 0xab5   : > { %v1656_v26 = vpop.xlane.xlu0 %1655 }
 0xab6   : > { %v1657_v27 = vmul.f32 0.03125, %v1656_v26 }
 0xab8   : > { %v1658_v28 = vsub.f32 %v1651_v24, %v1657_v27 }
 0xaba   : > { %v1659_v29 = vmul.f32 %v1658_v28, %v1658_v28 }
 0xabc   : > { %v1660_v30 = vsel %vm699_vm0, %v1659_v29, 0.0 }
 0xabd   : > { %1661 = vadd.xlane.f32.xlu1 %v1660_v30 }
 0xb4a   : > { %v1662_v35 = vpop.xlane.xlu1 %1661 }
 0xb4b   : > { %v1663_v36 = vmul.f32 0.03125, %v1662_v35 }
 0xb4d   : > { %v1664_v37 = vadd.f32 1e-05, %v1663_v36 }
 0xb4f   : > { %3289 = vrsqrt.f32 %v1664_v37 }
 0xb59   : > { %v3290_v38 = vpop.eup %3289 }
 0xb5a   : > { %v1666_v40 = vmul.f32 %v3290_v38, %v1658_v28 }
 0xb5c   : > { %v1673_v42 = vmul.f32 %v2823_v39, %v1666_v40 }
 0xb5e   : > { %v3779_v43 = vadd.f32 %v2824_v41, %v1673_v42 }
 0xb60   : > { %v1681_v46 = vpack.c.bf16 %v3779_v43, %v3779_v43 }
 0xb62   : > { %3087 = vmatmul.mubr.msk.bf16.vlgmr.msra.gmra.mrb[28].mxu0 %vm699_vm0, %v1681_v46  ;;  %3103 = vmatmul.mubr.msk.bf16.vlgmr.msra.gmra.mrb[28].mxu1 %vm699_vm0, %v1681_v46 }
 0xb63   : > { %3091 = vmatpush3.bf16.msra.mxu0 %v3255_v45  ;;  %3094 = vmatprep.mubr.msk.bf16.mxu0 %vm3378_vm1, %v3377_v9 }
 0xb64   : > { %3092 = vmatprep.subr.bf16.mxu0 %v3377_v9  ;;  %3114 = vmatprep.mubr.msk.bf16.mxu1 %vm3378_vm1, %v3377_v9 }
 0xb67   : > { %3093 = vmatpush3.bf16.msra.mxu0 %v3256_v47 }
 0xb68   : > { %3106 = vmatprep.subr.bf16.mxu0 %v3377_v9 }
 0xb6a   : > { %3095 = vmatmul.mubr.msk.bf16.vlgmr.msra.gmra.mrb[32].mxu0 %vm699_vm0, %v1681_v46 }
 0xb6b   : > { %3108 = vmatprep.mubr.msk.bf16.mxu0 %vm3378_vm1, %v3377_v9 }
 0xc35   : > { %v1744_v20 = vpop.f32.mrb[28].mxu0  ;;  %v1874_v50 = vpop.f32.mrb[28].mxu1 }
 0xc36   : > { %v1745_v51 = vadd.f32 %v2830_v48, %v1744_v20  ;;  %v1875_v52 = vadd.f32 %v2848_v49, %v1874_v50  ;;  %v3088_v53 = vpop.f32.mrb[29].mxu0  ;;  %v3104_v54 = vpop.f32.mrb[29].mxu1 }
 0xc37   : > { %v1747_v55 = vpop.f32.mrb[30].mxu0  ;;  %v1877_v56 = vpop.f32.mrb[30].mxu1 }
 0xc38   : > { %v1880_v57 = vpack.c.bf16 %v1745_v51, %v1745_v51  ;;  %v3806_v58 = vpack.c.bf16 %v1875_v52, %v1875_v52  ;;  %v3089_v59 = vpop.f32.mrb[31].mxu0  ;;  %v3105_v60 = vpop.f32.mrb[31].mxu1 }
 0xc3a   : > { %1990 = vrot.lane.b32.xlu1 %v1880_v57, %s3380_s2  ;;  %v1947_v61 = vsel %vm994_vm3, %v3806_v58, 0 }
 0xc3b   : > { %3113 = vmatpush3.bf16.msra.mxu1 %v1947_v61 }
 0xc3c   : > { %3124 = vmatprep.subr.bf16.mxu1 %v3377_v9 }
 0xc3d   : > { %v1809_v44 = vpop.f32.mrb[32].mxu0 }
 0xc3e   : > { %v1810_v0 = vadd.f32 %v2839_v63, %v1809_v44  ;;  %v3096_v1 = vpop.f32.mrb[33].mxu0 }
 0xc3f   : > { %v1812_v2 = vpop.f32.mrb[34].mxu0 }
 0xc40   : > { %v1881_v3 = vpack.c.bf16 %v1810_v0, %v1810_v0  ;;  %v3097_v4 = vpop.f32.mrb[35].mxu0 }
 0xc42   : > { %2106 = vrot.lane.b32.xlu1 %v1881_v3, %s3379_s5  ;;  %1993 = vrot.lane.b32.xlu0 %v1881_v3, %s3380_s2  ;;  %v1887_v5 = vsel %vm924_vm2, %v1881_v3, 0 }
 0xc43   : > { %3107 = vmatpush3.bf16.xpose.msra.mxu0 %v1887_v5 }
 0xc44   : > { %3118 = vmatprep.subr.bf16.mxu0 %v3377_v9 }
 0xc46   : > { %2218 = vrot.lane.b32.xlu1 %v1881_v3, %s4068_s0  ;;  %2104 = vrot.lane.b32.xlu0 %v1880_v57, %s3379_s5 }
 0xc4a   : > { %2216 = vrot.lane.b32.xlu0 %v1880_v57, %s4068_s0  ;;  %3109 = vmatmul.mubr.msk.bf16.vlgmr.msra.gmra.mrb[36].mxu0 %vm924_vm2, %v1880_v57 }
 0xc4b   : > { %3120 = vmatprep.mubr.msk.bf16.mxu0 %vm3378_vm1, %v3377_v9 }
 0xcac   : > { %v1991_v8 = vpop.permute.xlu1 %1990 }
 0xcb4   : > { %v1994_v6 = vpop.permute.xlu0 %1993  ;;  %v2107_v10 = vpop.permute.xlu1 %2106 }
 0xcb5   : > { %v1999_v7 = vsel %vm924_vm2, %v1994_v6, 0  ;;  %v2112_v11 = vsel %vm924_vm2, %v2107_v10, 0 }
 0xcb6   : > { %3119 = vmatpush3.bf16.xpose.msra.mxu0 %v1999_v7 }
 0xcb7   : > { %3130 = vmatprep.subr.bf16.mxu0 %v3377_v9 }
 0xcb8   : > { %v2219_v12 = vpop.permute.xlu1 %2218  ;;  %v2105_v13 = vpop.permute.xlu0 %2104 }
 0xcb9   : > { %v2224_v14 = vsel %vm924_vm2, %v2219_v12, 0 }
 0xcbc   : > { %v2217_v15 = vpop.permute.xlu0 %2216 }
 0xcbd   : > { %3121 = vmatmul.mubr.msk.bf16.vlgmr.msra.gmra.mrb[40].mxu0 %vm924_vm2, %v1991_v8 }
 0xcbe   : > { %3131 = vmatpush3.bf16.xpose.msra.mxu0 %v2112_v11  ;;  %3132 = vmatprep.mubr.msk.bf16.mxu0 %vm3378_vm1, %v3377_v9 }
 0xcbf   : > { %3142 = vmatprep.subr.bf16.mxu0 %v3377_v9 }
 0xcc5   : > { %3133 = vmatmul.mubr.msk.bf16.vlgmr.msra.gmra.mrb[44].mxu0 %vm924_vm2, %v2105_v13 }
 0xcc6   : > { %3143 = vmatpush3.bf16.xpose.msra.mxu0 %v2224_v14  ;;  %3144 = vmatprep.mubr.msk.bf16.mxu0 %vm3378_vm1, %v3377_v9 }
 0xcc7   : > { %3154 = vmatprep.subr.bf16.mxu0 %v3377_v9 }
 0xccd   : > { %3145 = vmatmul.mubr.msk.bf16.vlgmr.msra.gmra.mrb[48].mxu0 %vm924_vm2, %v2217_v15 }
 0xcce   : > { %3158 = vmatprep.mubr.msk.bf16.mxu0 %vm3378_vm1, %v3377_v9 }
 0xd1d   : > { %v1923_v16 = vpop.f32.mrb[36].mxu0 }
 0xd1e   : > { %v1929_v17 = vmul.f32 0.35355338, %v1923_v16  ;;  %v3110_v18 = vpop.f32.mrb[37].mxu0 }
 0xd1f   : > { %v1926_v19 = vpop.f32.mrb[38].mxu0 }
 0xd20   : > { %v3111_v21 = vpop.f32.mrb[39].mxu0  ;;  %v1930_v22 = vadd.f32 %v1929_v17, %v3652_v62 }
 0xd22   : > { %v1931_v23 = vsel %vm924_vm2, %v1930_v22, -inf }
 0xd23   : > { %1932 = vmax.xlane.f32.xlu1 %v1931_v23 }
 0xd90   : > { %v2035_v24 = vpop.f32.mrb[40].mxu0 }
 0xd91   : > { %v2041_v25 = vmul.f32 0.35355338, %v2035_v24  ;;  %v3122_v26 = vpop.f32.mrb[41].mxu0 }
 0xd92   : > { %v2038_v27 = vpop.f32.mrb[42].mxu0 }
 0xd93   : > { %v3123_v28 = vpop.f32.mrb[43].mxu0  ;;  %v2042_v29 = vadd.f32 %v2041_v25, %v3652_v62 }
 0xd95   : > { %v2043_v30 = vsel %vm924_vm2, %v2042_v29, -inf }
 0xd96   : > { %2044 = vmax.xlane.f32.xlu0 %v2043_v30 }
 0xd98   : > { %v2148_v31 = vpop.f32.mrb[44].mxu0 }
 0xd99   : > { %v2154_v32 = vmul.f32 0.35355338, %v2148_v31  ;;  %v3134_v33 = vpop.f32.mrb[45].mxu0 }
 0xd9a   : > { %v2151_v34 = vpop.f32.mrb[46].mxu0 }
 0xd9b   : > { %v3135_v35 = vpop.f32.mrb[47].mxu0  ;;  %v2155_v36 = vadd.f32 %v2154_v32, %v3652_v62 }
 0xd9d   : > { %v2156_v37 = vsel %vm924_vm2, %v2155_v36, -inf }
 0xd9e   : > { %2157 = vmax.xlane.f32.xlu0 %v2156_v37 }
 0xda0   : > { %v2260_v38 = vpop.f32.mrb[48].mxu0 }
 0xda1   : > { %v2266_v39 = vmul.f32 0.35355338, %v2260_v38  ;;  %v3146_v40 = vpop.f32.mrb[49].mxu0  ;;  %v3258_v38 = vld [vmem:[%s4014_s10 + $0x18] sm:$0xff]  }
 0xda2   : > { %v2263_v41 = vpop.f32.mrb[50].mxu0 }
 0xda3   : > { %v3147_v42 = vpop.f32.mrb[51].mxu0  ;;  %v2267_v45 = vadd.f32 %v2266_v39, %v3652_v62 }
 0xda5   : > { %v2268_v46 = vsel %vm924_vm2, %v2267_v45, -inf }
 0xda6   : > { %2269 = vmax.xlane.f32.xlu1 %v2268_v46 }
 0xdb0   : > { %v1933_v47 = vpop.xlane.xlu1 %1932 }
 0xdb1   : > { %v1934_v48 = vsub.f32 %v1930_v22, %v1933_v47 }
 0xdb3   : > { %v1935_v49 = vmul.f32 1.442695, %v1934_v48 }
 0xdb5   : > { %3291 = vpow2.f32 %v1935_v49 }
 0xdbf   : > { %v3292_v20 = vpop.eup %3291 }
 0xdc0   : > { %v1937_v50 = vsel %vm924_vm2, %v3292_v20, 0.0 }
 0xdc1   : > { %1938 = vadd.xlane.f32.xlu0 %v1937_v50 }
 0xe23   : > { %v2045_v51 = vpop.xlane.xlu0 %2044 }
 0xe24   : > { %v2046_v52 = vsub.f32 %v2042_v29, %v2045_v51  ;;  %v3257_v29 = vld [vmem:[%s4014_s10 + $0x10] sm:$0xff]   ;;  %v2865_v51 = vld [vmem:[%s4015_s11 + $0x1] ss:$0 sm:$0xff] }
 0xe25   : > { %3155 = vmatpush3.bf16.msra.mxu0 %v3257_v29 }
 0xe26   : > { %v2047_v53 = vmul.f32 1.442695, %v2046_v52  ;;  %3156 = vmatprep.subr.bf16.mxu0 %v3377_v9 }
 0xe28   : > { %3293 = vpow2.f32 %v2047_v53 }
 0xe29   : > { %3157 = vmatpush3.bf16.msra.mxu0 %v3258_v38 }
 0xe2a   : > { %3170 = vmatprep.subr.bf16.mxu0 %v3377_v9 }
 0xe2b   : > { %v2158_v54 = vpop.xlane.xlu0 %2157 }
 0xe2c   : > { %v2159_v55 = vsub.f32 %v2155_v36, %v2158_v54 }
 0xe2e   : > { %v2160_v56 = vmul.f32 1.442695, %v2159_v55 }
 0xe30   : > { %3295 = vpow2.f32 %v2160_v56 }
 0xe32   : > { %v3294_v62 = vpop.eup %3293 }
 0xe33   : > { %v2049_v57 = vsel %vm924_vm2, %v3294_v62, 0.0  ;;  %v2270_v63 = vpop.xlane.xlu1 %2269 }
 0xe34   : > { %2050 = vadd.xlane.f32.xlu1 %v2049_v57  ;;  %v2271_v44 = vsub.f32 %v2267_v45, %v2270_v63 }
 0xe36   : > { %v2272_v0 = vmul.f32 1.442695, %v2271_v44 }
 0xe3a   : > { %v3296_v59 = vpop.eup %3295 }
 0xe3b   : > { %v2162_v60 = vsel %vm924_vm2, %v3296_v59, 0.0 }
 0xe3c   : > { %2163 = vadd.xlane.f32.xlu0 %v2162_v60 }
 0xe45   : > { %2168 = vrot.lane.b32.xlu1 %v3806_v58, %s3379_s5  ;;  %s2904_s5 = sshll.u32 %s3522_s4, 4 }
 0xe4e   : > { %v1939_v61 = vpop.xlane.xlu0 %1938 }
 0xe4f   : > { %3297 = vrcp.f32 %v1939_v61 }
 0xe50   : > { %3299 = vpow2.f32 %v2272_v0  ;;  %v3259_v0 = vld [vmem:[%s4018_s14 + $0x10] sm:$0xff]  }
 0xe52   : > { %2056 = vrot.lane.b32.xlu0 %v3806_v58, %s3380_s2  ;;  %s684_s2 = scalar_lea.vmem [#allocation2], %s683_s1 }
 0xe59   : > { %v3298_v1 = vpop.eup %3297 }
 0xe5a   : > { %v1941_v2 = vmul.f32 %v3298_v1, %v3292_v20  ;;  %v3300_v4 = vpop.eup %3299 }
 0xe5b   : > { %v2274_v5 = vsel %vm924_vm2, %v3300_v4, 0.0 }
 0xe5c   : > { %v1942_v3 = vpack.c.bf16 %v1941_v2, %v1941_v2 }
 0xe5e   : > { %3115 = vmatmul.mubr.msk.bf16.vlgmr.msra.gmra.mrb[32].mxu1 %vm924_vm2, %v1942_v3 }
 0xe5f   : > { %3126 = vmatprep.mubr.msk.bf16.mxu1 %vm3378_vm1, %v3377_v9 }
 0xe69   : > { %2275 = vadd.xlane.f32.xlu1 %v2274_v5  ;;  %v2871_v5 = vld [vmem:[%s4016_s12 + $0x1] ss:$0 sm:$0xff] }
 0xe7a   : > { %2280 = vrot.lane.b32.xlu1 %v3806_v58, %s4068_s0  ;;  %s3385_s0 = smov [#allocation2]  }
 0xe7b   : > { %s3317_s7 = sshll.u32 %s3385_s0, 4  ;;  %s3318_s7 = int_to_ptr.vmem [resolvable:$false] %s3317_s7 }
 0xec1   : > { %v2051_v6 = vpop.xlane.xlu1 %2050 }
 0xec2   : > { %3301 = vrcp.f32 %v2051_v6 }
 0xec5   : > { %v2169_v13 = vpop.permute.xlu1 %2168 }
 0xec6   : > { %v2174_v15 = vsel %vm994_vm3, %v2169_v13, 0  ;;  %v3262_v13 = vld [vmem:[%s4020_s16 + $0x28] sm:$0xff]  }
 0xec9   : > { %v2164_v7 = vpop.xlane.xlu0 %2163 }
 0xeca   : > { %3303 = vrcp.f32 %v2164_v7  ;;  %v2872_v7 = vld [vmem:[%s4017_s13 + $0x1] ss:$0 sm:$0xff] }
 0xecc   : > { %v3302_v8 = vpop.eup %3301 }
 0xecd   : > { %v2053_v10 = vmul.f32 %v3302_v8, %v3294_v62  ;;  %v2057_v11 = vpop.permute.xlu0 %2056 }
 0xece   : > { %v2062_v12 = vsel %vm994_vm3, %v2057_v11, 0 }
 0xecf   : > { %3125 = vmatpush3.bf16.msra.mxu1 %v2062_v12  ;;  %v2054_v14 = vpack.c.bf16 %v2053_v10, %v2053_v10  ;;  %v3261_v12 = vld [vmem:[%s4020_s16 + $0x20] sm:$0xff]  }
 0xed0   : > { %3136 = vmatprep.subr.bf16.mxu1 %v3377_v9 }
 0xed2   : > { %3127 = vmatmul.mubr.msk.bf16.vlgmr.msra.gmra.mrb[36].mxu1 %vm924_vm2, %v2054_v14  ;;  %v3263_v14 = vld [vmem:[%s4020_s16 + $0x30] sm:$0xff]  }
 0xed3   : > { %3137 = vmatpush3.bf16.msra.mxu1 %v2174_v15  ;;  %3138 = vmatprep.mubr.msk.bf16.mxu1 %vm3378_vm1, %v3377_v9  ;;  %v3264_v15 = vld [vmem:[%s4020_s16 + $0x38] sm:$0xff]  }
 0xed4   : > { %v3304_v58 = vpop.eup %3303  ;;  %3148 = vmatprep.subr.bf16.mxu1 %v3377_v9 }
 0xed5   : > { %v2166_v16 = vmul.f32 %v3304_v58, %v3296_v59  ;;  %v2878_v58 = vld [vmem:[%s4019_s15 + $0x1] ss:$0 sm:$0xff] }
 0xed7   : > { %v2167_v17 = vpack.c.bf16 %v2166_v16, %v2166_v16 }
 0xeda   : > { %3139 = vmatmul.mubr.msk.bf16.vlgmr.msra.gmra.mrb[40].mxu1 %vm924_vm2, %v2167_v17 }
 0xedb   : > { %3150 = vmatprep.mubr.msk.bf16.mxu1 %vm3378_vm1, %v3377_v9 }
 0xef6   : > { %v2276_v18 = vpop.xlane.xlu1 %2275 }
 0xef7   : > { %3305 = vrcp.f32 %v2276_v18 }
 0xefa   : > { %v2281_v19 = vpop.permute.xlu1 %2280 }
 0xefb   : > { %v2286_v21 = vsel %vm994_vm3, %v2281_v19, 0 }
 0xefc   : > { %3149 = vmatpush3.bf16.msra.mxu1 %v2286_v21 }
 0xefd   : > { %3162 = vmatprep.subr.bf16.mxu1 %v3377_v9 }
 0xf01   : > { %v3306_v22 = vpop.eup %3305 }
 0xf02   : > { %v2278_v23 = vmul.f32 %v3306_v22, %v3300_v4 }
 0xf04   : > { %v2279_v24 = vpack.c.bf16 %v2278_v23, %v2278_v23 }
 0xf06   : > { %3151 = vmatmul.mubr.msk.bf16.vlgmr.msra.gmra.mrb[44].mxu1 %vm924_vm2, %v2279_v24 }
 0xf07   : > { %3166 = vmatprep.mubr.msk.bf16.mxu1 %vm3378_vm1, %v3377_v9  ;;  %3163 = vmatpush3.bf16.msra.mxu1 %v3259_v0 }
 0xf08   : > { %3164 = vmatprep.subr.bf16.mxu1 %v3377_v9 }
 0xf31   : > { %v1983_v25 = vpop.f32.mrb[32].mxu1 }
 0xf32   : > { %v3116_v26 = vpop.f32.mrb[33].mxu1 }
 0xf33   : > { %v1986_v27 = vpop.f32.mrb[34].mxu1 }
 0xf34   : > { %v3117_v28 = vpop.f32.mrb[35].mxu1 }
 0xfa5   : > { %v2098_v30 = vpop.f32.mrb[36].mxu1 }
 0xfa6   : > { %2329 = vrot.lane.b32.xlu0 %v2098_v30, %s4069_s24  ;;  %v3128_v31 = vpop.f32.mrb[37].mxu1  ;;  %s2715_s24 = sshll.u32 %s684_s2, 4  ;;  %s3964_s24 = int_to_ptr.vmem [resolvable:$true] %s2715_s24 }
 0xfa7   : > { %v2101_v32 = vpop.f32.mrb[38].mxu1  ;;  %s3313_s4 = scalar_lea.vmem %s3964_s24, 16  ;;  %p3320_p0 = scmp.lt.s32.totalorder %s3964_s24, %s3318_s7 }
 0xfa8   : > { %v3129_v33 = vpop.f32.mrb[39].mxu1  ;;  %v2891_v32 = vld [vmem:[%s4021_s17 + $0x1] ss:$0 sm:$0xff]  ;;  %p3314_p11 = scmp.ne.s32.totalorder %s3964_s24, %s3313_s4 }
 0xfaa   : > { %p3315_p12 = pnand %p3314_p11, %p3539_p5 }
 0xfac   : > { %p3316_p13 = pneg %p3315_p12 }
 0xfad   : > { %v2210_v34 = vpop.f32.mrb[40].mxu1 }
 0xfae   : > { %2333 = vrot.lane.b32.xlu1 %v2210_v34, %s4070_s29  ;;  %v3140_v35 = vpop.f32.mrb[41].mxu1  ;;  %s3319_s29 = scalar_lea.vmem %s3318_s7, 32 }
 0xfaf   : > { %v2213_v36 = vpop.f32.mrb[42].mxu1  ;;  %p3321_p1 = scmp.lt.s32.totalorder %s3319_s29, %s3313_s4 }
 0xfb0   : > { %v3141_v37 = vpop.f32.mrb[43].mxu1 }
 0xfb1   : > { %p3322_p2 = por %p3321_p1, %p3320_p0 }
 0xfb3   : > { %p3323_p3 = pnand %p3322_p2, %p3316_p13 }
 0xfd9   : > { %v2322_v39 = vpop.f32.mrb[44].mxu1 }
 0xfda   : > { %2337 = vrot.lane.b32.xlu0 %v2322_v39, %s4071_s27  ;;  %v3152_v40 = vpop.f32.mrb[45].mxu1  ;;  %s3962_s27 = scalar_lea.hbm %s4072_s26, %s2904_s5 }
 0xfdb   : > { %v2325_v41 = vpop.f32.mrb[46].mxu1 }
 0xfdc   : > { %v3153_v42 = vpop.f32.mrb[47].mxu1 }
0x1018   : > { %v2330_v45 = vpop.permute.xlu0 %2329 }
0x1019   : > { %v2340_v47 = vsel %vm924_vm2, %v1983_v25, %v2330_v45 }
0x1020   : > { %v2334_v46 = vpop.permute.xlu1 %2333 }
0x1021   : > { %v2341_v48 = vsel %vm1390_vm4, %v2340_v47, %v2334_v46  ;;  %v3265_v47 = vld [vmem:[%s4024_s20] sm:$0xff]  }
0x104c   : > { %v2338_v49 = vpop.permute.xlu0 %2337 }
0x104d   : > { %v2342_v20 = vsel %vm1392_vm5, %v2341_v48, %v2338_v49  ;;  %v3266_v48 = vld [vmem:[%s4024_s20 + $0x8] sm:$0xff]  }
0x104e   : > { %v2343_v50 = vpack.c.bf16 %v2342_v20, %v2342_v20 }
0x1050   : > { %3159 = vmatmul.mubr.msk.bf16.vlgmr.msra.gmra.mrb[52].mxu0 %vm699_vm0, %v2343_v50 }
0x1051   : > { %3178 = vmatprep.mubr.msk.bf16.mxu0 %vm3378_vm1, %v3377_v9  ;;  %3171 = vmatpush3.bf16.msra.mxu0 %v3261_v12 }
0x1052   : > { %3172 = vmatprep.subr.bf16.mxu0 %v3377_v9 }
0x1055   : > { %3173 = vmatpush3.bf16.msra.mxu0 %v3262_v13 }
0x1056   : > { %3174 = vmatprep.subr.bf16.mxu0 %v3377_v9 }
0x1059   : > { %3175 = vmatpush3.bf16.msra.mxu0 %v3263_v14 }
0x105a   : > { %3176 = vmatprep.subr.bf16.mxu0 %v3377_v9 }
0x105d   : > { %3177 = vmatpush3.bf16.msra.mxu0 %v3264_v15 }
0x1123   : > { %v2406_v52 = vpop.f32.mrb[52].mxu0 }
0x1124   : > { %v2407_v53 = vadd.f32 %v2865_v51, %v2406_v52  ;;  %v3160_v54 = vpop.f32.mrb[53].mxu0  ;;  %v2899_v52 = vld [vmem:[%s4022_s18 + $0x1] ss:$0 sm:$0xff] }
0x1125   : > { %v2409_v55 = vpop.f32.mrb[54].mxu0  ;;  %v2900_v54 = vld [vmem:[%s4023_s19 + $0x1] ss:$0 sm:$0xff] }
0x1126   : > { %v3161_v56 = vpop.f32.mrb[55].mxu0  ;;  %v2412_v62 = vadd.f32 %v2407_v53, %v3779_v43  ;;  %v3260_v43 = vld [vmem:[%s4018_s14 + $0x18] sm:$0xff]  }
0x1127   : > { %3165 = vmatpush3.bf16.msra.mxu1 %v3260_v43 }
0x1128   : > { %v2417_v57 = vsel %vm699_vm0, %v2412_v62, 0.0  ;;  %3182 = vmatprep.subr.bf16.mxu1 %v3377_v9 }
0x1129   : > { %2418 = vadd.xlane.f32.xlu1 %v2417_v57  ;;  %v2645_v57 = vld [vmem:[%s4025_s21] sm:$0x1] }
0x11b6   : > { %v2419_v59 = vpop.xlane.xlu1 %2418 }
0x11b7   : > { %v2420_v60 = vmul.f32 0.03125, %v2419_v59 }
0x11b9   : > { %v2421_v61 = vsub.f32 %v2412_v62, %v2420_v60 }
0x11bb   : > { %v2422_v63 = vmul.f32 %v2421_v61, %v2421_v61 }
0x11bd   : > { %v2423_v44 = vsel %vm699_vm0, %v2422_v63, 0.0 }
0x11be   : > { %2424 = vadd.xlane.f32.xlu0 %v2423_v44 }
0x124b   : > { %v2425_v1 = vpop.xlane.xlu0 %2424 }
0x124c   : > { %v2426_v2 = vmul.f32 0.03125, %v2425_v1 }
0x124e   : > { %v2427_v3 = vadd.f32 1e-05, %v2426_v2 }
0x1250   : > { %3307 = vrsqrt.f32 %v2427_v3 }
0x125a   : > { %v3308_v4 = vpop.eup %3307 }
0x125b   : > { %v2429_v6 = vmul.f32 %v3308_v4, %v2421_v61 }
0x125d   : > { %v2436_v8 = vmul.f32 %v2871_v5, %v2429_v6 }
0x125f   : > { %v2443_v10 = vadd.f32 %v2872_v7, %v2436_v8 }
0x1261   : > { %v2444_v11 = vpack.c.bf16 %v2443_v10, %v2443_v10 }
0x1263   : > { %3167 = vmatmul.mubr.msk.bf16.vlgmr.msra.gmra.mrb[48].mxu1 %vm699_vm0, %v2444_v11 }
0x1264   : > { %3186 = vmatprep.mubr.msk.bf16.mxu1 %vm3378_vm1, %v3377_v9  ;;  %3183 = vmatpush3.bf16.msra.mxu1 %v3265_v47 }
0x1265   : > { %3184 = vmatprep.subr.bf16.mxu1 %v3377_v9 }
0x1268   : > { %3185 = vmatpush3.bf16.msra.mxu1 %v3266_v48 }
0x1336   : > { %v2507_v16 = vpop.f32.mrb[48].mxu1 }
0x1337   : > { %v2508_v17 = vadd.f32 %v2878_v58, %v2507_v16  ;;  %v3168_v18 = vpop.f32.mrb[49].mxu1 }
0x1338   : > { %v2510_v19 = vpop.f32.mrb[50].mxu1 }
0x1339   : > { %v2513_v21 = vmul.f32 %v2508_v17, %v2508_v17  ;;  %v3169_v22 = vpop.f32.mrb[51].mxu1 }
0x133b   : > { %v2514_v23 = vmul.f32 %v2513_v21, %v2508_v17 }
0x133d   : > { %v2515_v24 = vmul.f32 0.044715, %v2514_v23 }
0x133f   : > { %v2516_v25 = vadd.f32 %v2515_v24, %v2508_v17 }
0x1341   : > { %v2517_v26 = vmul.f32 0.7978846, %v2516_v25 }
0x1343   : > { %3309 = vtanh.f32 %v2517_v26 }
0x134d   : > { %v3310_v27 = vpop.eup %3309 }
0x134e   : > { %v2519_v28 = vadd.f32 1.0, %v3310_v27 }
0x1350   : > { %v2520_v29 = vmul.f32 0.5, %v2519_v28 }
0x1352   : > { %v2521_v30 = vmul.f32 %v2520_v29, %v2508_v17 }
0x1354   : > { %v2522_v31 = vpack.c.bf16 %v2521_v30, %v2521_v30 }
0x1356   : > { %3179 = vmatmul.mubr.msk.bf16.vlgmr.msra.gmra.mrb[56].mxu0 %vm1607_vm6, %v2522_v31 }
0x1429   : > { %v2601_v33 = vpop.f32.mrb[56].mxu0 }
0x142a   : > { %v2602_v34 = vadd.f32 %v2891_v32, %v2601_v33  ;;  %v3180_v35 = vpop.f32.mrb[57].mxu0 }
0x142b   : > { %v2604_v36 = vpop.f32.mrb[58].mxu0 }
0x142c   : > { %v3181_v37 = vpop.f32.mrb[59].mxu0  ;;  %v2607_v38 = vadd.f32 %v2602_v34, %v2443_v10 }
0x142e   : > { %v2612_v39 = vsel %vm699_vm0, %v2607_v38, 0.0 }
0x142f   : > { %2613 = vadd.xlane.f32.xlu0 %v2612_v39 }
0x14bc   : > { %v2614_v40 = vpop.xlane.xlu0 %2613 }
0x14bd   : > { %v2615_v41 = vmul.f32 0.03125, %v2614_v40 }
0x14bf   : > { %v2616_v42 = vsub.f32 %v2607_v38, %v2615_v41 }
0x14c1   : > { %v2617_v45 = vmul.f32 %v2616_v42, %v2616_v42 }
0x14c3   : > { %v2618_v46 = vsel %vm699_vm0, %v2617_v45, 0.0 }
0x14c4   : > { %2619 = vadd.xlane.f32.xlu1 %v2618_v46 }
0x1551   : > { %v2620_v49 = vpop.xlane.xlu1 %2619 }
0x1552   : > { %v2621_v20 = vmul.f32 0.03125, %v2620_v49 }
0x1554   : > { %v2622_v50 = vadd.f32 1e-05, %v2621_v20 }
0x1556   : > { %3311 = vrsqrt.f32 %v2622_v50 }
0x1560   : > { %v3312_v51 = vpop.eup %3311 }
0x1561   : > { %v2624_v53 = vmul.f32 %v3312_v51, %v2616_v42 }
0x1563   : > { %v2631_v55 = vmul.f32 %v2899_v52, %v2624_v53 }
0x1565   : > { %v2638_v56 = vadd.f32 %v2900_v54, %v2631_v55 }
0x1567   : > { %v2639_v62 = vmax.f32 %v2638_v56, 0.0 }
0x1569   : > { %v2640_v9 = vpack.c.bf16 %v2639_v62, %v2639_v62 }
0x156b   : > { %3187 = vmatmul.mubr.msk.bf16.vlgmr.msra.gmra.mrb[52].mxu1 %vm699_vm0, %v2640_v9 }
0x163e   : > { %v2695_v59 = vpop.f32.mrb[52].mxu1 }
0x163f   : > { %v2696_v60 = vadd.f32 %v2695_v59, %v2645_v57  ;;  %v3188_v61 = vpop.f32.mrb[53].mxu1 }
0x1640   : > { %v2698_v63 = vpop.f32.mrb[54].mxu1 }
0x1641   : > { %2701 = vst [vmem:[%s684_s2] sm:$0x1] %v2696_v60  ;;  %v3189_v44 = vpop.f32.mrb[55].mxu1 }
0x1642   : > { %3326 = shalt.err (!%p3323_p3)
}
0x1643   : > { %s3327_s1 = scalar_lea.hbm %s3962_s27, 16  ;;  %s3331_s30 = scalar_lea.hbm %s4072_s26, 32 }
0x1644   : > { %p3328_p4 = scmp.ne.s32.totalorder %s3962_s27, %s3327_s1  ;;  %p3332_p9 = scmp.lt.u32.totalorder %s3962_s27, %s4072_s26 }
0x1645   : > { %p3333_p10 = scmp.lt.u32.totalorder %s3331_s30, %s3327_s1  ;;  %p3335_p12 = scmp.lt.u32.totalorder %s3327_s1, %s3962_s27 }
0x1646   : > { %p3329_p7 = pnand %p3328_p4, %p3539_p5 }
0x1647   : > { %p3334_p11 = por %p3333_p10, %p3332_p9 }
0x1648   : > { %p3330_p8 = pneg %p3329_p7 }
0x1649   : > { %p3336_p13 = por %p3335_p12, %p3334_p11 }
0x164b   : > { %p3337_p0 = pnand %p3336_p13, %p3330_p8 }
0x164d   : > { %3340 = shalt.err (!%p3337_p0)
}
0x164e   : > { %3190 = dma.vmem_to_hbm [thread:$0]  (%p3539_p5), %s3964_s24, 16, %s3962_s27, %s2703_s3  }
0x164f PF: > { %s4073_s4 = sld [smem:[#allocation7_spill]]  ;;  %s4074_s29 = sld [smem:[#allocation5_spill]] }
0x1655   : > { %p3196_p1 = scmp.ge.s32.totalorder %s4073_s4, 2  ;;  %s2727_s2 = sand.u32 1, %s4074_s29  }
0x1656   : > { %s2728_s0 = scalar_lea.sflag [#allocation3], %s2727_s2 }
0x1657   : > { %p3193_p2 = pnand %p3196_p1, %p3543_p6 }
0x1659   : > { %3358 = dma.done.wait (!%p3193_p2), %s2728_s0, 16  }
0x165a   : > { %3360 = vsyncadd (!%p3193_p2), %s2728_s0, 4294967280  ;;  %s4076_s30 = sld [smem:[#allocation8_spill]]  ;;  %s4077_s1 = sld [smem:[#allocation6_spill]] }
0x165b   : > { %s4078_s29 = sld [smem:[#allocation9_spill]]  ;;  %s4079_s3 = smov %s3367_s28 }
0x1660   : > { %p32_p3 = scmp.ge.s32.totalorder %s4076_s30, 4   ;;  %s4080_s28 = smov %s4077_s1 }
0x1662   :  { %34 = sbr.rel (!%p32_p3) target bundleno = 13 (0xd), region = 162 }
0x1669   :  { %2732 = vsyncpa [#allocation3], 1 }
0x166a   :  { %2734 = vsyncpa [#allocation3 + $0x1], 1 }

</bundles_post_ra>
